<compile_context>
chip_gen: v6e
topology: v6e:2x2x1
jax: 0.10.0
libtpu: 0.0.40
codegen_flags: <defaults>
</compile_context>

<pallas_src>
import jax
import jax.numpy as jnp
from jax.experimental import pallas as pl
from jax.experimental.pallas import tpu as pltpu

VMEM_LIMIT_BYTES = 48 * 1024 * 1024      # <= 64 MiB physical on v7x, > default scoped on v5e/v6e
BLOCK_BUDGET_BYTES = 8 * 1024 * 1024     # per-step block working set target (incl. double-buffer)


def _round_up(x, m):
    return (x + m - 1) // m * m


def _pick_block_batch(batch, bytes_per_item, budget):
    """Largest divisor of `batch` fitting the budget, preferring >=2 grid steps (v7x dual TC)."""
    divs = [d for d in range(1, batch + 1) if batch % d == 0]
    fits = [d for d in divs if d * bytes_per_item <= budget] or [1]
    multi = [d for d in fits if batch // d >= 2]
    return max(multi) if multi else max(fits)


def atrous_conv2_forward(x, params):
    """AtrousConv2 forward. x: (B, Cin, H, W)."""
    B, Cin, H, W = x.shape
    conv_ws = [params["conv1_w"], params["conv2_w"], params["conv3_w"]]
    conv_bs = [params["conv1_b"], params["conv2_b"], params["conv3_b"]]
    Cout = conv_ws[0].shape[0]

    # ---- geometry: pad 3 everywhere (max dilation), flatten with row stride Wp ----
    Wp = W + 6
    L = _round_up(H * Wp, 128)               # lane-dense output length (junk cols masked/dropped)
    max_off = 6 * Wp + 6                     # largest tap offset (d=3, kh=kw=2)
    L_in = _round_up(L + max_off, 128)       # flattened, zero-extended input length

    xp = jnp.pad(x, ((0, 0), (0, 0), (3, 3), (3, 3)))
    x_flat = xp.reshape(B, Cin, (H + 6) * Wp)
    x_flat = jnp.pad(x_flat, ((0, 0), (0, 0), (0, L_in - (H + 6) * Wp))).astype(x.dtype)

    # ---- weights: (3 dilations, 9 taps, Cout, Cin) in the input dtype; bias in f32 ----
    w_all = jnp.stack(
        [jnp.transpose(w, (2, 3, 0, 1)).reshape(9, Cout, Cin) for w in conv_ws],
        axis=0).astype(x.dtype)                                   # (3, 9, Cout, Cin)
    b_all = jnp.stack([b.reshape(Cout, 1) for b in conv_bs], axis=0).astype(jnp.float32)

    # ---- ECA: k-tap Conv1d over channels expressed as a tiny (Cout,Cout) band matrix ----
    eca_w = params["eca_w"].astype(jnp.float32)
    k = eca_w.shape[0]
    assert k % 2 == 1, "ECA kernel size must be odd to match PyTorch Conv1d padding"
    pad = (k - 1) // 2
    ci = jnp.arange(Cout)[:, None]
    cj = jnp.arange(Cout)[None, :]
    tap_idx = cj - ci + pad
    band = jnp.where((tap_idx >= 0) & (tap_idx < k),
                     eca_w[jnp.clip(tap_idx, 0, k - 1)], 0.0).astype(jnp.float32)

    # ---- folded eval-mode BatchNorm affine ----
    # TODO(synk): training-mode BatchNorm (batch statistics) is not implemented; eval-mode only.
    scale_v = params["bn_gamma"] / jnp.sqrt(params["bn_var"] + params["bn_eps"])
    shift_v = params["bn_beta"] - params["bn_mean"] * scale_v
    scale = scale_v.astype(jnp.float32).reshape(Cout, 1)
    shift = shift_v.astype(jnp.float32).reshape(Cout, 1)

    # ---- validity mask over the flattened (padded) spatial grid ----
    j = jnp.arange(L)
    mask = (((j % Wp) < W) & (j < H * Wp)).astype(jnp.float32).reshape(1, L)

    # ---- block-batch choice: real itemsize, 2x double-buffer, prefer >=2 grid steps ----
    # TODO(synk): very large H*W could exceed VMEM even at bt=1; an HW-tiled fallback (two-pass
    # mean for the ECA gate) is not implemented.
    itemsize = x.dtype.itemsize
    per_image = 2 * (Cin * L_in + Cout * L) * itemsize       # double-buffered in+out blocks
    fixed = 3 * Cout * L * 4                                 # f32 branch scratch (single copy)
    bt = _pick_block_batch(B, per_image, max(BLOCK_BUDGET_BYTES - fixed, 1))

    taps = [(kh, kw) for kh in range(3) for kw in range(3)]
    inv_hw = 1.0 / float(H * W)

    def kernel(x_ref, w_ref, b_ref, band_ref, scale_ref, shift_ref, mask_ref, o_ref, y_scr):
        # x_ref:   (bt, Cin, L_in)   flattened padded input (native dtype)
        # w_ref:   (3, 9, Cout, Cin) conv taps (native dtype)
        # b_ref:   (3, Cout, 1) f32; band_ref: (Cout, Cout) f32; scale/shift: (Cout, 1) f32
        # mask_ref:(1, L) f32 valid-position mask
        # o_ref:   (bt, Cout, L)     lane-dense output
        # y_scr:   VMEM (3, Cout, L) f32 branch outputs
        m = mask_ref[...]
        band_m = band_ref[...]
        for i in range(bt):                                   # static unroll over images in block
            gates = []
            for d_idx in range(3):                            # dilations 1, 2, 3
                d = d_idx + 1
                acc = jnp.zeros((Cout, L), jnp.float32)
                for t, (kh, kw) in enumerate(taps):           # 9 accumulated tap matmuls (MXU)
                    off = ((kh - 1) * d + 3) * Wp + ((kw - 1) * d + 3)
                    acc = acc + jnp.dot(w_ref[d_idx, t],
                                        x_ref[i, :, off:off + L],
                                        preferred_element_type=jnp.float32)
                acc = acc + b_ref[d_idx]                      # bias
                y_scr[d_idx] = acc                            # keep branch in VMEM (f32)
                pooled = jnp.sum(acc * m, axis=-1, keepdims=True) * inv_hw      # (Cout, 1)
                gates.append(jax.nn.sigmoid(
                    jnp.dot(band_m, pooled, preferred_element_type=jnp.float32)))
            # ECA gate * 1/3 mix (f32) + folded BN + ReLU, single lane-dense store
            mixed = (y_scr[0] * gates[0] + y_scr[1] * gates[1] + y_scr[2] * gates[2]) * (1.0 / 3.0)
            out = mixed * scale_ref[...] + shift_ref[...]
            o_ref[i] = jnp.maximum(out, 0.0).astype(o_ref.dtype)

    out_flat = pl.pallas_call(
        kernel,
        out_shape=jax.ShapeDtypeStruct((B, Cout, L), x.dtype),
        grid_spec=pltpu.PrefetchScalarGridSpec(
            num_scalar_prefetch=0,
            grid=(B // bt,),
            in_specs=[
                pl.BlockSpec((bt, Cin, L_in), lambda b: (b, 0, 0)),
                pl.BlockSpec((3, 9, Cout, Cin), lambda b: (0, 0, 0, 0)),
                pl.BlockSpec((3, Cout, 1), lambda b: (0, 0, 0)),
                pl.BlockSpec((Cout, Cout), lambda b: (0, 0)),
                pl.BlockSpec((Cout, 1), lambda b: (0, 0)),
                pl.BlockSpec((Cout, 1), lambda b: (0, 0)),
                pl.BlockSpec((1, L), lambda b: (0, 0)),
            ],
            out_specs=pl.BlockSpec((bt, Cout, L), lambda b: (b, 0, 0)),
            scratch_shapes=[pltpu.VMEM((3, Cout, L), jnp.float32)],
        ),
        compiler_params=pltpu.CompilerParams(
            dimension_semantics=("parallel",),
            vmem_limit_bytes=VMEM_LIMIT_BYTES,
        ),
    )(x_flat, w_all, b_all, band, scale, shift, mask)

    # drop the padded/junk columns: (B, Cout, L) -> (B, Cout, H, W)
    out = out_flat[:, :, :H * Wp].reshape(B, Cout, H, Wp)[:, :, :, :W]
    return out


# --------------------------------------------------------------------------------------
# Pure-JAX reference
# --------------------------------------------------------------------------------------
def _reference(x, params):
    eca_w = params["eca_w"]
    k = eca_w.shape[0]
    pad = (k - 1) // 2
    gated = []
    for idx, d in enumerate((1, 2, 3), start=1):
        w = params[f"conv{idx}_w"]
        b = params[f"conv{idx}_b"]
        o = jax.lax.conv_general_dilated(
            x, w, window_strides=(1, 1), padding=((d, d), (d, d)),
            rhs_dilation=(d, d), dimension_numbers=("NCHW", "OIHW", "NCHW"))
        o = o + b[None, :, None, None]
        y = jnp.mean(o, axis=(2, 3))                             # (B, C)
        ypad = jnp.pad(y, ((0, 0), (pad, pad)))
        conv = sum(eca_w[i] * ypad[:, i:i + y.shape[1]] for i in range(k))
        gated.append(o * jax.nn.sigmoid(conv)[:, :, None, None])
    mix = (gated[0] + gated[1] + gated[2]) / 3.0
    inv = 1.0 / jnp.sqrt(params["bn_var"] + params["bn_eps"])
    bn = ((mix - params["bn_mean"][None, :, None, None])
          * (params["bn_gamma"] * inv)[None, :, None, None]
          + params["bn_beta"][None, :, None, None])
    return jnp.maximum(bn, 0.0)


if __name__ == "__main__":
    B, Cin, Cout, H, W = 2, 4, 8, 16, 16
    k_size = 5

    key = jax.random.PRNGKey(0)
    keys = jax.random.split(key, 12)
    x = jax.random.normal(keys[0], (B, Cin, H, W), dtype=jnp.float32)

    bound = 1.0 / ((Cin * 9) ** 0.5)
    params = {}
    for i in range(3):
        params[f"conv{i + 1}_w"] = jax.random.uniform(
            keys[1 + i], (Cout, Cin, 3, 3), jnp.float32, -bound, bound)
        params[f"conv{i + 1}_b"] = jax.random.uniform(
            keys[4 + i], (Cout,), jnp.float32, -bound, bound)
    eca_bound = 1.0 / (k_size ** 0.5)
    params["eca_w"] = jax.random.uniform(keys[7], (k_size,), jnp.float32,
                                         -eca_bound, eca_bound)
    params["bn_gamma"] = jax.random.uniform(keys[8], (Cout,), jnp.float32, 0.5, 1.5)
    params["bn_beta"] = jax.random.uniform(keys[9], (Cout,), jnp.float32, -0.5, 0.5)
    params["bn_mean"] = jax.random.uniform(keys[10], (Cout,), jnp.float32, -0.2, 0.2)
    params["bn_var"] = jax.random.uniform(keys[11], (Cout,), jnp.float32, 0.5, 1.5)
    params["bn_eps"] = 1e-5

    out = atrous_conv2_forward(x, params)
    jax.block_until_ready(out)

    ref = _reference(x, params)
    assert out.shape == ref.shape
    err = float(jnp.max(jnp.abs(out - ref)))
    assert jnp.allclose(out, ref, atol=1e-4, rtol=1e-4), f"mismatch vs reference, max|err|={err}"

    print("KERNEL_OK")
</pallas_src>

<mosaic_0001>
module attributes {stable_mosaic.version = 11 : i64} {
  func.func @kernel(%arg0: i32, %arg1: memref<1x4x640xf32, #tpu.memory_space<vmem>>, %arg2: memref<3x9x8x4xf32, #tpu.memory_space<vmem>>, %arg3: memref<3x8x1xf32, #tpu.memory_space<vmem>>, %arg4: memref<8x8xf32, #tpu.memory_space<vmem>>, %arg5: memref<8x1xf32, #tpu.memory_space<vmem>>, %arg6: memref<8x1xf32, #tpu.memory_space<vmem>>, %arg7: memref<1x384xf32, #tpu.memory_space<vmem>>, %arg8: memref<1x8x384xf32, #tpu.memory_space<vmem>>, %arg9: memref<3x8x384xf32, #tpu.memory_space<vmem>>) attributes {dimension_semantics = [#tpu.dimension_semantics<parallel>], iteration_bounds = array<i64: 2>, scalar_prefetch = 0 : i64, scratch_operands = 1 : i64, tpu.core_type = #tpu.core_type<tc>, window_params = [{transform_indices = @transform_0, window_bounds = array<i64: 1, 4, 640>}, {pipeline_mode = #tpu.pipeline_mode<synchronous>, transform_indices = @transform_1, window_bounds = array<i64: 3, 9, 8, 4>}, {pipeline_mode = #tpu.pipeline_mode<synchronous>, transform_indices = @transform_2, window_bounds = array<i64: 3, 8, 1>}, {pipeline_mode = #tpu.pipeline_mode<synchronous>, transform_indices = @transform_3, window_bounds = array<i64: 8, 8>}, {pipeline_mode = #tpu.pipeline_mode<synchronous>, transform_indices = @transform_4, window_bounds = array<i64: 8, 1>}, {pipeline_mode = #tpu.pipeline_mode<synchronous>, transform_indices = @transform_5, window_bounds = array<i64: 8, 1>}, {pipeline_mode = #tpu.pipeline_mode<synchronous>, transform_indices = @transform_6, window_bounds = array<i64: 1, 384>}, {transform_indices = @transform_7, window_bounds = array<i64: 1, 8, 384>}]} {
    %c0 = arith.constant 0 : index
    %c0_0 = arith.constant 0 : index
    %0 = vector.load %arg7[%c0, %c0_0] : memref<1x384xf32, #tpu.memory_space<vmem>>, vector<1x384xf32>
    %c0_1 = arith.constant 0 : index
    %c0_2 = arith.constant 0 : index
    %1 = vector.load %arg4[%c0_1, %c0_2] : memref<8x8xf32, #tpu.memory_space<vmem>>, vector<8x8xf32>
    %cst = arith.constant 0.000000e+00 : f32
    %2 = vector.broadcast %cst : f32 to vector<8x384xf32>
    %c0_3 = arith.constant 0 : index
    %c0_4 = arith.constant 0 : index
    %c0_5 = arith.constant 0 : index
    %c0_6 = arith.constant 0 : index
    %3 = vector.load %arg2[%c0_3, %c0_4, %c0_5, %c0_6] : memref<3x9x8x4xf32, #tpu.memory_space<vmem>>, vector<1x1x8x4xf32>
    %4 = vector.shape_cast %3 : vector<1x1x8x4xf32> to vector<8x4xf32>
    %c0_7 = arith.constant 0 : index
    %c0_8 = arith.constant 0 : index
    %c46 = arith.constant 46 : index
    %5 = vector.load %arg1[%c0_7, %c0_8, %c46] : memref<1x4x640xf32, #tpu.memory_space<vmem>>, vector<1x4x384xf32>
    %6 = vector.shape_cast %5 : vector<1x4x384xf32> to vector<4x384xf32>
    %cst_9 = arith.constant dense<0.000000e+00> : vector<8x384xf32>
    %7 = tpu.matmul %4, %6, %cst_9 {dimension_numbers = #tpu.dot_dimension_numbers<[1], [0], [0], [1], [0, 0, 1, 1], [], []>} : vector<8x4xf32>, vector<4x384xf32>, vector<8x384xf32> -> vector<8x384xf32>
    %8 = arith.addf %2, %7 : vector<8x384xf32>
    %c0_10 = arith.constant 0 : index
    %c1 = arith.constant 1 : index
    %c0_11 = arith.constant 0 : index
    %c0_12 = arith.constant 0 : index
    %9 = vector.load %arg2[%c0_10, %c1, %c0_11, %c0_12] : memref<3x9x8x4xf32, #tpu.memory_space<vmem>>, vector<1x1x8x4xf32>
    %10 = vector.shape_cast %9 : vector<1x1x8x4xf32> to vector<8x4xf32>
    %c0_13 = arith.constant 0 : index
    %c0_14 = arith.constant 0 : index
    %c47 = arith.constant 47 : index
    %11 = vector.load %arg1[%c0_13, %c0_14, %c47] : memref<1x4x640xf32, #tpu.memory_space<vmem>>, vector<1x4x384xf32>
    %12 = vector.shape_cast %11 : vector<1x4x384xf32> to vector<4x384xf32>
    %cst_15 = arith.constant dense<0.000000e+00> : vector<8x384xf32>
    %13 = tpu.matmul %10, %12, %cst_15 {dimension_numbers = #tpu.dot_dimension_numbers<[1], [0], [0], [1], [0, 0, 1, 1], [], []>} : vector<8x4xf32>, vector<4x384xf32>, vector<8x384xf32> -> vector<8x384xf32>
    %14 = arith.addf %8, %13 : vector<8x384xf32>
    %c0_16 = arith.constant 0 : index
    %c2 = arith.constant 2 : index
    %c0_17 = arith.constant 0 : index
    %c0_18 = arith.constant 0 : index
    %15 = vector.load %arg2[%c0_16, %c2, %c0_17, %c0_18] : memref<3x9x8x4xf32, #tpu.memory_space<vmem>>, vector<1x1x8x4xf32>
    %16 = vector.shape_cast %15 : vector<1x1x8x4xf32> to vector<8x4xf32>
    %c0_19 = arith.constant 0 : index
    %c0_20 = arith.constant 0 : index
    %c48 = arith.constant 48 : index
    %17 = vector.load %arg1[%c0_19, %c0_20, %c48] : memref<1x4x640xf32, #tpu.memory_space<vmem>>, vector<1x4x384xf32>
    %18 = vector.shape_cast %17 : vector<1x4x384xf32> to vector<4x384xf32>
    %cst_21 = arith.constant dense<0.000000e+00> : vector<8x384xf32>
    %19 = tpu.matmul %16, %18, %cst_21 {dimension_numbers = #tpu.dot_dimension_numbers<[1], [0], [0], [1], [0, 0, 1, 1], [], []>} : vector<8x4xf32>, vector<4x384xf32>, vector<8x384xf32> -> vector<8x384xf32>
    %20 = arith.addf %14, %19 : vector<8x384xf32>
    %c0_22 = arith.constant 0 : index
    %c3 = arith.constant 3 : index
    %c0_23 = arith.constant 0 : index
    %c0_24 = arith.constant 0 : index
    %21 = vector.load %arg2[%c0_22, %c3, %c0_23, %c0_24] : memref<3x9x8x4xf32, #tpu.memory_space<vmem>>, vector<1x1x8x4xf32>
    %22 = vector.shape_cast %21 : vector<1x1x8x4xf32> to vector<8x4xf32>
    %c0_25 = arith.constant 0 : index
    %c0_26 = arith.constant 0 : index
    %c68 = arith.constant 68 : index
    %23 = vector.load %arg1[%c0_25, %c0_26, %c68] : memref<1x4x640xf32, #tpu.memory_space<vmem>>, vector<1x4x384xf32>
    %24 = vector.shape_cast %23 : vector<1x4x384xf32> to vector<4x384xf32>
    %cst_27 = arith.constant dense<0.000000e+00> : vector<8x384xf32>
    %25 = tpu.matmul %22, %24, %cst_27 {dimension_numbers = #tpu.dot_dimension_numbers<[1], [0], [0], [1], [0, 0, 1, 1], [], []>} : vector<8x4xf32>, vector<4x384xf32>, vector<8x384xf32> -> vector<8x384xf32>
    %26 = arith.addf %20, %25 : vector<8x384xf32>
    %c0_28 = arith.constant 0 : index
    %c4 = arith.constant 4 : index
    %c0_29 = arith.constant 0 : index
    %c0_30 = arith.constant 0 : index
    %27 = vector.load %arg2[%c0_28, %c4, %c0_29, %c0_30] : memref<3x9x8x4xf32, #tpu.memory_space<vmem>>, vector<1x1x8x4xf32>
    %28 = vector.shape_cast %27 : vector<1x1x8x4xf32> to vector<8x4xf32>
    %c0_31 = arith.constant 0 : index
    %c0_32 = arith.constant 0 : index
    %c69 = arith.constant 69 : index
    %29 = vector.load %arg1[%c0_31, %c0_32, %c69] : memref<1x4x640xf32, #tpu.memory_space<vmem>>, vector<1x4x384xf32>
    %30 = vector.shape_cast %29 : vector<1x4x384xf32> to vector<4x384xf32>
    %cst_33 = arith.constant dense<0.000000e+00> : vector<8x384xf32>
    %31 = tpu.matmul %28, %30, %cst_33 {dimension_numbers = #tpu.dot_dimension_numbers<[1], [0], [0], [1], [0, 0, 1, 1], [], []>} : vector<8x4xf32>, vector<4x384xf32>, vector<8x384xf32> -> vector<8x384xf32>
    %32 = arith.addf %26, %31 : vector<8x384xf32>
    %c0_34 = arith.constant 0 : index
    %c5 = arith.constant 5 : index
    %c0_35 = arith.constant 0 : index
    %c0_36 = arith.constant 0 : index
    %33 = vector.load %arg2[%c0_34, %c5, %c0_35, %c0_36] : memref<3x9x8x4xf32, #tpu.memory_space<vmem>>, vector<1x1x8x4xf32>
    %34 = vector.shape_cast %33 : vector<1x1x8x4xf32> to vector<8x4xf32>
    %c0_37 = arith.constant 0 : index
    %c0_38 = arith.constant 0 : index
    %c70 = arith.constant 70 : index
    %35 = vector.load %arg1[%c0_37, %c0_38, %c70] : memref<1x4x640xf32, #tpu.memory_space<vmem>>, vector<1x4x384xf32>
    %36 = vector.shape_cast %35 : vector<1x4x384xf32> to vector<4x384xf32>
    %cst_39 = arith.constant dense<0.000000e+00> : vector<8x384xf32>
    %37 = tpu.matmul %34, %36, %cst_39 {dimension_numbers = #tpu.dot_dimension_numbers<[1], [0], [0], [1], [0, 0, 1, 1], [], []>} : vector<8x4xf32>, vector<4x384xf32>, vector<8x384xf32> -> vector<8x384xf32>
    %38 = arith.addf %32, %37 : vector<8x384xf32>
    %c0_40 = arith.constant 0 : index
    %c6 = arith.constant 6 : index
    %c0_41 = arith.constant 0 : index
    %c0_42 = arith.constant 0 : index
    %39 = vector.load %arg2[%c0_40, %c6, %c0_41, %c0_42] : memref<3x9x8x4xf32, #tpu.memory_space<vmem>>, vector<1x1x8x4xf32>
    %40 = vector.shape_cast %39 : vector<1x1x8x4xf32> to vector<8x4xf32>
    %c0_43 = arith.constant 0 : index
    %c0_44 = arith.constant 0 : index
    %c90 = arith.constant 90 : index
    %41 = vector.load %arg1[%c0_43, %c0_44, %c90] : memref<1x4x640xf32, #tpu.memory_space<vmem>>, vector<1x4x384xf32>
    %42 = vector.shape_cast %41 : vector<1x4x384xf32> to vector<4x384xf32>
    %cst_45 = arith.constant dense<0.000000e+00> : vector<8x384xf32>
    %43 = tpu.matmul %40, %42, %cst_45 {dimension_numbers = #tpu.dot_dimension_numbers<[1], [0], [0], [1], [0, 0, 1, 1], [], []>} : vector<8x4xf32>, vector<4x384xf32>, vector<8x384xf32> -> vector<8x384xf32>
    %44 = arith.addf %38, %43 : vector<8x384xf32>
    %c0_46 = arith.constant 0 : index
    %c7 = arith.constant 7 : index
    %c0_47 = arith.constant 0 : index
    %c0_48 = arith.constant 0 : index
    %45 = vector.load %arg2[%c0_46, %c7, %c0_47, %c0_48] : memref<3x9x8x4xf32, #tpu.memory_space<vmem>>, vector<1x1x8x4xf32>
    %46 = vector.shape_cast %45 : vector<1x1x8x4xf32> to vector<8x4xf32>
    %c0_49 = arith.constant 0 : index
    %c0_50 = arith.constant 0 : index
    %c91 = arith.constant 91 : index
    %47 = vector.load %arg1[%c0_49, %c0_50, %c91] : memref<1x4x640xf32, #tpu.memory_space<vmem>>, vector<1x4x384xf32>
    %48 = vector.shape_cast %47 : vector<1x4x384xf32> to vector<4x384xf32>
    %cst_51 = arith.constant dense<0.000000e+00> : vector<8x384xf32>
    %49 = tpu.matmul %46, %48, %cst_51 {dimension_numbers = #tpu.dot_dimension_numbers<[1], [0], [0], [1], [0, 0, 1, 1], [], []>} : vector<8x4xf32>, vector<4x384xf32>, vector<8x384xf32> -> vector<8x384xf32>
    %50 = arith.addf %44, %49 : vector<8x384xf32>
    %c0_52 = arith.constant 0 : index
    %c8 = arith.constant 8 : index
    %c0_53 = arith.constant 0 : index
    %c0_54 = arith.constant 0 : index
    %51 = vector.load %arg2[%c0_52, %c8, %c0_53, %c0_54] : memref<3x9x8x4xf32, #tpu.memory_space<vmem>>, vector<1x1x8x4xf32>
    %52 = vector.shape_cast %51 : vector<1x1x8x4xf32> to vector<8x4xf32>
    %c0_55 = arith.constant 0 : index
    %c0_56 = arith.constant 0 : index
    %c92 = arith.constant 92 : index
    %53 = vector.load %arg1[%c0_55, %c0_56, %c92] : memref<1x4x640xf32, #tpu.memory_space<vmem>>, vector<1x4x384xf32>
    %54 = vector.shape_cast %53 : vector<1x4x384xf32> to vector<4x384xf32>
    %cst_57 = arith.constant dense<0.000000e+00> : vector<8x384xf32>
    %55 = tpu.matmul %52, %54, %cst_57 {dimension_numbers = #tpu.dot_dimension_numbers<[1], [0], [0], [1], [0, 0, 1, 1], [], []>} : vector<8x4xf32>, vector<4x384xf32>, vector<8x384xf32> -> vector<8x384xf32>
    %56 = arith.addf %50, %55 : vector<8x384xf32>
    %c0_58 = arith.constant 0 : index
    %c0_59 = arith.constant 0 : index
    %c0_60 = arith.constant 0 : index
    %57 = vector.load %arg3[%c0_58, %c0_59, %c0_60] : memref<3x8x1xf32, #tpu.memory_space<vmem>>, vector<1x8x1xf32>
    %58 = vector.shape_cast %57 : vector<1x8x1xf32> to vector<8x1xf32>
    %59 = vector.broadcast %58 : vector<8x1xf32> to vector<8x384xf32>
    %60 = arith.addf %56, %59 : vector<8x384xf32>
    %c0_61 = arith.constant 0 : index
    %c0_62 = arith.constant 0 : index
    %c0_63 = arith.constant 0 : index
    %61 = vector.load %arg9[%c0_61, %c0_62, %c0_63] : memref<3x8x384xf32, #tpu.memory_space<vmem>>, vector<1x8x384xf32>
    %62 = vector.shape_cast %61 : vector<1x8x384xf32> to vector<8x384xf32>
    %63 = vector.shape_cast %60 : vector<8x384xf32> to vector<1x8x384xf32>
    tpu.vector_store %arg9[%c0_61, %c0_62, %c0_63], %63 {strides = array<i32>} : memref<3x8x384xf32, #tpu.memory_space<vmem>>, vector<1x8x384xf32>,
    %64 = vector.broadcast %0 : vector<1x384xf32> to vector<8x384xf32>
    %65 = arith.mulf %60, %64 : vector<8x384xf32>
    %cst_64 = arith.constant dense<0.000000e+00> : vector<8xf32>
    %66 = vector.multi_reduction <add>, %65, %cst_64 [1] : vector<8x384xf32> to vector<8xf32>
    %67 = vector.shape_cast %66 : vector<8xf32> to vector<8x1xf32>
    %cst_65 = arith.constant 3.906250e-03 : f32
    %68 = vector.broadcast %cst_65 : f32 to vector<8x1xf32>
    %69 = arith.mulf %67, %68 : vector<8x1xf32>
    %cst_66 = arith.constant dense<0.000000e+00> : vector<8x1xf32>
    %70 = tpu.matmul %1, %69, %cst_66 {dimension_numbers = #tpu.dot_dimension_numbers<[1], [0], [0], [1], [0, 0, 1, 1], [], []>} : vector<8x8xf32>, vector<8x1xf32>, vector<8x1xf32> -> vector<8x1xf32>
    %71 = arith.negf %70 : vector<8x1xf32>
    %72 = math.exp %71 : vector<8x1xf32>
    %cst_67 = arith.constant 1.000000e+00 : f32
    %73 = vector.broadcast %cst_67 : f32 to vector<8x1xf32>
    %74 = arith.addf %73, %72 : vector<8x1xf32>
    %75 = arith.divf %73, %74 : vector<8x1xf32>
    %cst_68 = arith.constant 0.000000e+00 : f32
    %76 = vector.broadcast %cst_68 : f32 to vector<8x384xf32>
    %c1_69 = arith.constant 1 : index
    %c0_70 = arith.constant 0 : index
    %c0_71 = arith.constant 0 : index
    %c0_72 = arith.constant 0 : index
    %77 = vector.load %arg2[%c1_69, %c0_70, %c0_71, %c0_72] : memref<3x9x8x4xf32, #tpu.memory_space<vmem>>, vector<1x1x8x4xf32>
    %78 = vector.shape_cast %77 : vector<1x1x8x4xf32> to vector<8x4xf32>
    %c0_73 = arith.constant 0 : index
    %c0_74 = arith.constant 0 : index
    %c23 = arith.constant 23 : index
    %79 = vector.load %arg1[%c0_73, %c0_74, %c23] : memref<1x4x640xf32, #tpu.memory_space<vmem>>, vector<1x4x384xf32>
    %80 = vector.shape_cast %79 : vector<1x4x384xf32> to vector<4x384xf32>
    %cst_75 = arith.constant dense<0.000000e+00> : vector<8x384xf32>
    %81 = tpu.matmul %78, %80, %cst_75 {dimension_numbers = #tpu.dot_dimension_numbers<[1], [0], [0], [1], [0, 0, 1, 1], [], []>} : vector<8x4xf32>, vector<4x384xf32>, vector<8x384xf32> -> vector<8x384xf32>
    %82 = arith.addf %76, %81 : vector<8x384xf32>
    %c1_76 = arith.constant 1 : index
    %c1_77 = arith.constant 1 : index
    %c0_78 = arith.constant 0 : index
    %c0_79 = arith.constant 0 : index
    %83 = vector.load %arg2[%c1_76, %c1_77, %c0_78, %c0_79] : memref<3x9x8x4xf32, #tpu.memory_space<vmem>>, vector<1x1x8x4xf32>
    %84 = vector.shape_cast %83 : vector<1x1x8x4xf32> to vector<8x4xf32>
    %c0_80 = arith.constant 0 : index
    %c0_81 = arith.constant 0 : index
    %c25 = arith.constant 25 : index
    %85 = vector.load %arg1[%c0_80, %c0_81, %c25] : memref<1x4x640xf32, #tpu.memory_space<vmem>>, vector<1x4x384xf32>
    %86 = vector.shape_cast %85 : vector<1x4x384xf32> to vector<4x384xf32>
    %cst_82 = arith.constant dense<0.000000e+00> : vector<8x384xf32>
    %87 = tpu.matmul %84, %86, %cst_82 {dimension_numbers = #tpu.dot_dimension_numbers<[1], [0], [0], [1], [0, 0, 1, 1], [], []>} : vector<8x4xf32>, vector<4x384xf32>, vector<8x384xf32> -> vector<8x384xf32>
    %88 = arith.addf %82, %87 : vector<8x384xf32>
    %c1_83 = arith.constant 1 : index
    %c2_84 = arith.constant 2 : index
    %c0_85 = arith.constant 0 : index
    %c0_86 = arith.constant 0 : index
    %89 = vector.load %arg2[%c1_83, %c2_84, %c0_85, %c0_86] : memref<3x9x8x4xf32, #tpu.memory_space<vmem>>, vector<1x1x8x4xf32>
    %90 = vector.shape_cast %89 : vector<1x1x8x4xf32> to vector<8x4xf32>
    %c0_87 = arith.constant 0 : index
    %c0_88 = arith.constant 0 : index
    %c27 = arith.constant 27 : index
    %91 = vector.load %arg1[%c0_87, %c0_88, %c27] : memref<1x4x640xf32, #tpu.memory_space<vmem>>, vector<1x4x384xf32>
    %92 = vector.shape_cast %91 : vector<1x4x384xf32> to vector<4x384xf32>
    %cst_89 = arith.constant dense<0.000000e+00> : vector<8x384xf32>
    %93 = tpu.matmul %90, %92, %cst_89 {dimension_numbers = #tpu.dot_dimension_numbers<[1], [0], [0], [1], [0, 0, 1, 1], [], []>} : vector<8x4xf32>, vector<4x384xf32>, vector<8x384xf32> -> vector<8x384xf32>
    %94 = arith.addf %88, %93 : vector<8x384xf32>
    %c1_90 = arith.constant 1 : index
    %c3_91 = arith.constant 3 : index
    %c0_92 = arith.constant 0 : index
    %c0_93 = arith.constant 0 : index
    %95 = vector.load %arg2[%c1_90, %c3_91, %c0_92, %c0_93] : memref<3x9x8x4xf32, #tpu.memory_space<vmem>>, vector<1x1x8x4xf32>
    %96 = vector.shape_cast %95 : vector<1x1x8x4xf32> to vector<8x4xf32>
    %c0_94 = arith.constant 0 : index
    %c0_95 = arith.constant 0 : index
    %c67 = arith.constant 67 : index
    %97 = vector.load %arg1[%c0_94, %c0_95, %c67] : memref<1x4x640xf32, #tpu.memory_space<vmem>>, vector<1x4x384xf32>
    %98 = vector.shape_cast %97 : vector<1x4x384xf32> to vector<4x384xf32>
    %cst_96 = arith.constant dense<0.000000e+00> : vector<8x384xf32>
    %99 = tpu.matmul %96, %98, %cst_96 {dimension_numbers = #tpu.dot_dimension_numbers<[1], [0], [0], [1], [0, 0, 1, 1], [], []>} : vector<8x4xf32>, vector<4x384xf32>, vector<8x384xf32> -> vector<8x384xf32>
    %100 = arith.addf %94, %99 : vector<8x384xf32>
    %c1_97 = arith.constant 1 : index
    %c4_98 = arith.constant 4 : index
    %c0_99 = arith.constant 0 : index
    %c0_100 = arith.constant 0 : index
    %101 = vector.load %arg2[%c1_97, %c4_98, %c0_99, %c0_100] : memref<3x9x8x4xf32, #tpu.memory_space<vmem>>, vector<1x1x8x4xf32>
    %102 = vector.shape_cast %101 : vector<1x1x8x4xf32> to vector<8x4xf32>
    %c0_101 = arith.constant 0 : index
    %c0_102 = arith.constant 0 : index
    %c69_103 = arith.constant 69 : index
    %103 = vector.load %arg1[%c0_101, %c0_102, %c69_103] : memref<1x4x640xf32, #tpu.memory_space<vmem>>, vector<1x4x384xf32>
    %104 = vector.shape_cast %103 : vector<1x4x384xf32> to vector<4x384xf32>
    %cst_104 = arith.constant dense<0.000000e+00> : vector<8x384xf32>
    %105 = tpu.matmul %102, %104, %cst_104 {dimension_numbers = #tpu.dot_dimension_numbers<[1], [0], [0], [1], [0, 0, 1, 1], [], []>} : vector<8x4xf32>, vector<4x384xf32>, vector<8x384xf32> -> vector<8x384xf32>
    %106 = arith.addf %100, %105 : vector<8x384xf32>
    %c1_105 = arith.constant 1 : index
    %c5_106 = arith.constant 5 : index
    %c0_107 = arith.constant 0 : index
    %c0_108 = arith.constant 0 : index
    %107 = vector.load %arg2[%c1_105, %c5_106, %c0_107, %c0_108] : memref<3x9x8x4xf32, #tpu.memory_space<vmem>>, vector<1x1x8x4xf32>
    %108 = vector.shape_cast %107 : vector<1x1x8x4xf32> to vector<8x4xf32>
    %c0_109 = arith.constant 0 : index
    %c0_110 = arith.constant 0 : index
    %c71 = arith.constant 71 : index
    %109 = vector.load %arg1[%c0_109, %c0_110, %c71] : memref<1x4x640xf32, #tpu.memory_space<vmem>>, vector<1x4x384xf32>
    %110 = vector.shape_cast %109 : vector<1x4x384xf32> to vector<4x384xf32>
    %cst_111 = arith.constant dense<0.000000e+00> : vector<8x384xf32>
    %111 = tpu.matmul %108, %110, %cst_111 {dimension_numbers = #tpu.dot_dimension_numbers<[1], [0], [0], [1], [0, 0, 1, 1], [], []>} : vector<8x4xf32>, vector<4x384xf32>, vector<8x384xf32> -> vector<8x384xf32>
    %112 = arith.addf %106, %111 : vector<8x384xf32>
    %c1_112 = arith.constant 1 : index
    %c6_113 = arith.constant 6 : index
    %c0_114 = arith.constant 0 : index
    %c0_115 = arith.constant 0 : index
    %113 = vector.load %arg2[%c1_112, %c6_113, %c0_114, %c0_115] : memref<3x9x8x4xf32, #tpu.memory_space<vmem>>, vector<1x1x8x4xf32>
    %114 = vector.shape_cast %113 : vector<1x1x8x4xf32> to vector<8x4xf32>
    %c0_116 = arith.constant 0 : index
    %c0_117 = arith.constant 0 : index
    %c111 = arith.constant 111 : index
    %115 = vector.load %arg1[%c0_116, %c0_117, %c111] : memref<1x4x640xf32, #tpu.memory_space<vmem>>, vector<1x4x384xf32>
    %116 = vector.shape_cast %115 : vector<1x4x384xf32> to vector<4x384xf32>
    %cst_118 = arith.constant dense<0.000000e+00> : vector<8x384xf32>
    %117 = tpu.matmul %114, %116, %cst_118 {dimension_numbers = #tpu.dot_dimension_numbers<[1], [0], [0], [1], [0, 0, 1, 1], [], []>} : vector<8x4xf32>, vector<4x384xf32>, vector<8x384xf32> -> vector<8x384xf32>
    %118 = arith.addf %112, %117 : vector<8x384xf32>
    %c1_119 = arith.constant 1 : index
    %c7_120 = arith.constant 7 : index
    %c0_121 = arith.constant 0 : index
    %c0_122 = arith.constant 0 : index
    %119 = vector.load %arg2[%c1_119, %c7_120, %c0_121, %c0_122] : memref<3x9x8x4xf32, #tpu.memory_space<vmem>>, vector<1x1x8x4xf32>
    %120 = vector.shape_cast %119 : vector<1x1x8x4xf32> to vector<8x4xf32>
    %c0_123 = arith.constant 0 : index
    %c0_124 = arith.constant 0 : index
    %c113 = arith.constant 113 : index
    %121 = vector.load %arg1[%c0_123, %c0_124, %c113] : memref<1x4x640xf32, #tpu.memory_space<vmem>>, vector<1x4x384xf32>
    %122 = vector.shape_cast %121 : vector<1x4x384xf32> to vector<4x384xf32>
    %cst_125 = arith.constant dense<0.000000e+00> : vector<8x384xf32>
    %123 = tpu.matmul %120, %122, %cst_125 {dimension_numbers = #tpu.dot_dimension_numbers<[1], [0], [0], [1], [0, 0, 1, 1], [], []>} : vector<8x4xf32>, vector<4x384xf32>, vector<8x384xf32> -> vector<8x384xf32>
    %124 = arith.addf %118, %123 : vector<8x384xf32>
    %c1_126 = arith.constant 1 : index
    %c8_127 = arith.constant 8 : index
    %c0_128 = arith.constant 0 : index
    %c0_129 = arith.constant 0 : index
    %125 = vector.load %arg2[%c1_126, %c8_127, %c0_128, %c0_129] : memref<3x9x8x4xf32, #tpu.memory_space<vmem>>, vector<1x1x8x4xf32>
    %126 = vector.shape_cast %125 : vector<1x1x8x4xf32> to vector<8x4xf32>
    %c0_130 = arith.constant 0 : index
    %c0_131 = arith.constant 0 : index
    %c115 = arith.constant 115 : index
    %127 = vector.load %arg1[%c0_130, %c0_131, %c115] : memref<1x4x640xf32, #tpu.memory_space<vmem>>, vector<1x4x384xf32>
    %128 = vector.shape_cast %127 : vector<1x4x384xf32> to vector<4x384xf32>
    %cst_132 = arith.constant dense<0.000000e+00> : vector<8x384xf32>
    %129 = tpu.matmul %126, %128, %cst_132 {dimension_numbers = #tpu.dot_dimension_numbers<[1], [0], [0], [1], [0, 0, 1, 1], [], []>} : vector<8x4xf32>, vector<4x384xf32>, vector<8x384xf32> -> vector<8x384xf32>
    %130 = arith.addf %124, %129 : vector<8x384xf32>
    %c1_133 = arith.constant 1 : index
    %c0_134 = arith.constant 0 : index
    %c0_135 = arith.constant 0 : index
    %131 = vector.load %arg3[%c1_133, %c0_134, %c0_135] : memref<3x8x1xf32, #tpu.memory_space<vmem>>, vector<1x8x1xf32>
    %132 = vector.shape_cast %131 : vector<1x8x1xf32> to vector<8x1xf32>
    %133 = vector.broadcast %132 : vector<8x1xf32> to vector<8x384xf32>
    %134 = arith.addf %130, %133 : vector<8x384xf32>
    %c1_136 = arith.constant 1 : index
    %c0_137 = arith.constant 0 : index
    %c0_138 = arith.constant 0 : index
    %135 = vector.load %arg9[%c1_136, %c0_137, %c0_138] : memref<3x8x384xf32, #tpu.memory_space<vmem>>, vector<1x8x384xf32>
    %136 = vector.shape_cast %135 : vector<1x8x384xf32> to vector<8x384xf32>
    %137 = vector.shape_cast %134 : vector<8x384xf32> to vector<1x8x384xf32>
    tpu.vector_store %arg9[%c1_136, %c0_137, %c0_138], %137 {strides = array<i32>} : memref<3x8x384xf32, #tpu.memory_space<vmem>>, vector<1x8x384xf32>,
    %138 = vector.broadcast %0 : vector<1x384xf32> to vector<8x384xf32>
    %139 = arith.mulf %134, %138 : vector<8x384xf32>
    %cst_139 = arith.constant dense<0.000000e+00> : vector<8xf32>
    %140 = vector.multi_reduction <add>, %139, %cst_139 [1] : vector<8x384xf32> to vector<8xf32>
    %141 = vector.shape_cast %140 : vector<8xf32> to vector<8x1xf32>
    %cst_140 = arith.constant 3.906250e-03 : f32
    %142 = vector.broadcast %cst_140 : f32 to vector<8x1xf32>
    %143 = arith.mulf %141, %142 : vector<8x1xf32>
    %cst_141 = arith.constant dense<0.000000e+00> : vector<8x1xf32>
    %144 = tpu.matmul %1, %143, %cst_141 {dimension_numbers = #tpu.dot_dimension_numbers<[1], [0], [0], [1], [0, 0, 1, 1], [], []>} : vector<8x8xf32>, vector<8x1xf32>, vector<8x1xf32> -> vector<8x1xf32>
    %145 = arith.negf %144 : vector<8x1xf32>
    %146 = math.exp %145 : vector<8x1xf32>
    %cst_142 = arith.constant 1.000000e+00 : f32
    %147 = vector.broadcast %cst_142 : f32 to vector<8x1xf32>
    %148 = arith.addf %147, %146 : vector<8x1xf32>
    %149 = arith.divf %147, %148 : vector<8x1xf32>
    %cst_143 = arith.constant 0.000000e+00 : f32
    %150 = vector.broadcast %cst_143 : f32 to vector<8x384xf32>
    %c2_144 = arith.constant 2 : index
    %c0_145 = arith.constant 0 : index
    %c0_146 = arith.constant 0 : index
    %c0_147 = arith.constant 0 : index
    %151 = vector.load %arg2[%c2_144, %c0_145, %c0_146, %c0_147] : memref<3x9x8x4xf32, #tpu.memory_space<vmem>>, vector<1x1x8x4xf32>
    %152 = vector.shape_cast %151 : vector<1x1x8x4xf32> to vector<8x4xf32>
    %c0_148 = arith.constant 0 : index
    %c0_149 = arith.constant 0 : index
    %c0_150 = arith.constant 0 : index
    %153 = vector.load %arg1[%c0_148, %c0_149, %c0_150] : memref<1x4x640xf32, #tpu.memory_space<vmem>>, vector<1x4x384xf32>
    %154 = vector.shape_cast %153 : vector<1x4x384xf32> to vector<4x384xf32>
    %cst_151 = arith.constant dense<0.000000e+00> : vector<8x384xf32>
    %155 = tpu.matmul %152, %154, %cst_151 {dimension_numbers = #tpu.dot_dimension_numbers<[1], [0], [0], [1], [0, 0, 1, 1], [], []>} : vector<8x4xf32>, vector<4x384xf32>, vector<8x384xf32> -> vector<8x384xf32>
    %156 = arith.addf %150, %155 : vector<8x384xf32>
    %c2_152 = arith.constant 2 : index
    %c1_153 = arith.constant 1 : index
    %c0_154 = arith.constant 0 : index
    %c0_155 = arith.constant 0 : index
    %157 = vector.load %arg2[%c2_152, %c1_153, %c0_154, %c0_155] : memref<3x9x8x4xf32, #tpu.memory_space<vmem>>, vector<1x1x8x4xf32>
    %158 = vector.shape_cast %157 : vector<1x1x8x4xf32> to vector<8x4xf32>
    %c0_156 = arith.constant 0 : index
    %c0_157 = arith.constant 0 : index
    %c3_158 = arith.constant 3 : index
    %159 = vector.load %arg1[%c0_156, %c0_157, %c3_158] : memref<1x4x640xf32, #tpu.memory_space<vmem>>, vector<1x4x384xf32>
    %160 = vector.shape_cast %159 : vector<1x4x384xf32> to vector<4x384xf32>
    %cst_159 = arith.constant dense<0.000000e+00> : vector<8x384xf32>
    %161 = tpu.matmul %158, %160, %cst_159 {dimension_numbers = #tpu.dot_dimension_numbers<[1], [0], [0], [1], [0, 0, 1, 1], [], []>} : vector<8x4xf32>, vector<4x384xf32>, vector<8x384xf32> -> vector<8x384xf32>
    %162 = arith.addf %156, %161 : vector<8x384xf32>
    %c2_160 = arith.constant 2 : index
    %c2_161 = arith.constant 2 : index
    %c0_162 = arith.constant 0 : index
    %c0_163 = arith.constant 0 : index
    %163 = vector.load %arg2[%c2_160, %c2_161, %c0_162, %c0_163] : memref<3x9x8x4xf32, #tpu.memory_space<vmem>>, vector<1x1x8x4xf32>
    %164 = vector.shape_cast %163 : vector<1x1x8x4xf32> to vector<8x4xf32>
    %c0_164 = arith.constant 0 : index
    %c0_165 = arith.constant 0 : index
    %c6_166 = arith.constant 6 : index
    %165 = vector.load %arg1[%c0_164, %c0_165, %c6_166] : memref<1x4x640xf32, #tpu.memory_space<vmem>>, vector<1x4x384xf32>
    %166 = vector.shape_cast %165 : vector<1x4x384xf32> to vector<4x384xf32>
    %cst_167 = arith.constant dense<0.000000e+00> : vector<8x384xf32>
    %167 = tpu.matmul %164, %166, %cst_167 {dimension_numbers = #tpu.dot_dimension_numbers<[1], [0], [0], [1], [0, 0, 1, 1], [], []>} : vector<8x4xf32>, vector<4x384xf32>, vector<8x384xf32> -> vector<8x384xf32>
    %168 = arith.addf %162, %167 : vector<8x384xf32>
    %c2_168 = arith.constant 2 : index
    %c3_169 = arith.constant 3 : index
    %c0_170 = arith.constant 0 : index
    %c0_171 = arith.constant 0 : index
    %169 = vector.load %arg2[%c2_168, %c3_169, %c0_170, %c0_171] : memref<3x9x8x4xf32, #tpu.memory_space<vmem>>, vector<1x1x8x4xf32>
    %170 = vector.shape_cast %169 : vector<1x1x8x4xf32> to vector<8x4xf32>
    %c0_172 = arith.constant 0 : index
    %c0_173 = arith.constant 0 : index
    %c66 = arith.constant 66 : index
    %171 = vector.load %arg1[%c0_172, %c0_173, %c66] : memref<1x4x640xf32, #tpu.memory_space<vmem>>, vector<1x4x384xf32>
    %172 = vector.shape_cast %171 : vector<1x4x384xf32> to vector<4x384xf32>
    %cst_174 = arith.constant dense<0.000000e+00> : vector<8x384xf32>
    %173 = tpu.matmul %170, %172, %cst_174 {dimension_numbers = #tpu.dot_dimension_numbers<[1], [0], [0], [1], [0, 0, 1, 1], [], []>} : vector<8x4xf32>, vector<4x384xf32>, vector<8x384xf32> -> vector<8x384xf32>
    %174 = arith.addf %168, %173 : vector<8x384xf32>
    %c2_175 = arith.constant 2 : index
    %c4_176 = arith.constant 4 : index
    %c0_177 = arith.constant 0 : index
    %c0_178 = arith.constant 0 : index
    %175 = vector.load %arg2[%c2_175, %c4_176, %c0_177, %c0_178] : memref<3x9x8x4xf32, #tpu.memory_space<vmem>>, vector<1x1x8x4xf32>
    %176 = vector.shape_cast %175 : vector<1x1x8x4xf32> to vector<8x4xf32>
    %c0_179 = arith.constant 0 : index
    %c0_180 = arith.constant 0 : index
    %c69_181 = arith.constant 69 : index
    %177 = vector.load %arg1[%c0_179, %c0_180, %c69_181] : memref<1x4x640xf32, #tpu.memory_space<vmem>>, vector<1x4x384xf32>
    %178 = vector.shape_cast %177 : vector<1x4x384xf32> to vector<4x384xf32>
    %cst_182 = arith.constant dense<0.000000e+00> : vector<8x384xf32>
    %179 = tpu.matmul %176, %178, %cst_182 {dimension_numbers = #tpu.dot_dimension_numbers<[1], [0], [0], [1], [0, 0, 1, 1], [], []>} : vector<8x4xf32>, vector<4x384xf32>, vector<8x384xf32> -> vector<8x384xf32>
    %180 = arith.addf %174, %179 : vector<8x384xf32>
    %c2_183 = arith.constant 2 : index
    %c5_184 = arith.constant 5 : index
    %c0_185 = arith.constant 0 : index
    %c0_186 = arith.constant 0 : index
    %181 = vector.load %arg2[%c2_183, %c5_184, %c0_185, %c0_186] : memref<3x9x8x4xf32, #tpu.memory_space<vmem>>, vector<1x1x8x4xf32>
    %182 = vector.shape_cast %181 : vector<1x1x8x4xf32> to vector<8x4xf32>
    %c0_187 = arith.constant 0 : index
    %c0_188 = arith.constant 0 : index
    %c72 = arith.constant 72 : index
    %183 = vector.load %arg1[%c0_187, %c0_188, %c72] : memref<1x4x640xf32, #tpu.memory_space<vmem>>, vector<1x4x384xf32>
    %184 = vector.shape_cast %183 : vector<1x4x384xf32> to vector<4x384xf32>
    %cst_189 = arith.constant dense<0.000000e+00> : vector<8x384xf32>
    %185 = tpu.matmul %182, %184, %cst_189 {dimension_numbers = #tpu.dot_dimension_numbers<[1], [0], [0], [1], [0, 0, 1, 1], [], []>} : vector<8x4xf32>, vector<4x384xf32>, vector<8x384xf32> -> vector<8x384xf32>
    %186 = arith.addf %180, %185 : vector<8x384xf32>
    %c2_190 = arith.constant 2 : index
    %c6_191 = arith.constant 6 : index
    %c0_192 = arith.constant 0 : index
    %c0_193 = arith.constant 0 : index
    %187 = vector.load %arg2[%c2_190, %c6_191, %c0_192, %c0_193] : memref<3x9x8x4xf32, #tpu.memory_space<vmem>>, vector<1x1x8x4xf32>
    %188 = vector.shape_cast %187 : vector<1x1x8x4xf32> to vector<8x4xf32>
    %c0_194 = arith.constant 0 : index
    %c0_195 = arith.constant 0 : index
    %c132 = arith.constant 132 : index
    %189 = vector.load %arg1[%c0_194, %c0_195, %c132] : memref<1x4x640xf32, #tpu.memory_space<vmem>>, vector<1x4x384xf32>
    %190 = vector.shape_cast %189 : vector<1x4x384xf32> to vector<4x384xf32>
    %cst_196 = arith.constant dense<0.000000e+00> : vector<8x384xf32>
    %191 = tpu.matmul %188, %190, %cst_196 {dimension_numbers = #tpu.dot_dimension_numbers<[1], [0], [0], [1], [0, 0, 1, 1], [], []>} : vector<8x4xf32>, vector<4x384xf32>, vector<8x384xf32> -> vector<8x384xf32>
    %192 = arith.addf %186, %191 : vector<8x384xf32>
    %c2_197 = arith.constant 2 : index
    %c7_198 = arith.constant 7 : index
    %c0_199 = arith.constant 0 : index
    %c0_200 = arith.constant 0 : index
    %193 = vector.load %arg2[%c2_197, %c7_198, %c0_199, %c0_200] : memref<3x9x8x4xf32, #tpu.memory_space<vmem>>, vector<1x1x8x4xf32>
    %194 = vector.shape_cast %193 : vector<1x1x8x4xf32> to vector<8x4xf32>
    %c0_201 = arith.constant 0 : index
    %c0_202 = arith.constant 0 : index
    %c135 = arith.constant 135 : index
    %195 = vector.load %arg1[%c0_201, %c0_202, %c135] : memref<1x4x640xf32, #tpu.memory_space<vmem>>, vector<1x4x384xf32>
    %196 = vector.shape_cast %195 : vector<1x4x384xf32> to vector<4x384xf32>
    %cst_203 = arith.constant dense<0.000000e+00> : vector<8x384xf32>
    %197 = tpu.matmul %194, %196, %cst_203 {dimension_numbers = #tpu.dot_dimension_numbers<[1], [0], [0], [1], [0, 0, 1, 1], [], []>} : vector<8x4xf32>, vector<4x384xf32>, vector<8x384xf32> -> vector<8x384xf32>
    %198 = arith.addf %192, %197 : vector<8x384xf32>
    %c2_204 = arith.constant 2 : index
    %c8_205 = arith.constant 8 : index
    %c0_206 = arith.constant 0 : index
    %c0_207 = arith.constant 0 : index
    %199 = vector.load %arg2[%c2_204, %c8_205, %c0_206, %c0_207] : memref<3x9x8x4xf32, #tpu.memory_space<vmem>>, vector<1x1x8x4xf32>
    %200 = vector.shape_cast %199 : vector<1x1x8x4xf32> to vector<8x4xf32>
    %c0_208 = arith.constant 0 : index
    %c0_209 = arith.constant 0 : index
    %c138 = arith.constant 138 : index
    %201 = vector.load %arg1[%c0_208, %c0_209, %c138] : memref<1x4x640xf32, #tpu.memory_space<vmem>>, vector<1x4x384xf32>
    %202 = vector.shape_cast %201 : vector<1x4x384xf32> to vector<4x384xf32>
    %cst_210 = arith.constant dense<0.000000e+00> : vector<8x384xf32>
    %203 = tpu.matmul %200, %202, %cst_210 {dimension_numbers = #tpu.dot_dimension_numbers<[1], [0], [0], [1], [0, 0, 1, 1], [], []>} : vector<8x4xf32>, vector<4x384xf32>, vector<8x384xf32> -> vector<8x384xf32>
    %204 = arith.addf %198, %203 : vector<8x384xf32>
    %c2_211 = arith.constant 2 : index
    %c0_212 = arith.constant 0 : index
    %c0_213 = arith.constant 0 : index
    %205 = vector.load %arg3[%c2_211, %c0_212, %c0_213] : memref<3x8x1xf32, #tpu.memory_space<vmem>>, vector<1x8x1xf32>
    %206 = vector.shape_cast %205 : vector<1x8x1xf32> to vector<8x1xf32>
    %207 = vector.broadcast %206 : vector<8x1xf32> to vector<8x384xf32>
    %208 = arith.addf %204, %207 : vector<8x384xf32>
    %c2_214 = arith.constant 2 : index
    %c0_215 = arith.constant 0 : index
    %c0_216 = arith.constant 0 : index
    %209 = vector.load %arg9[%c2_214, %c0_215, %c0_216] : memref<3x8x384xf32, #tpu.memory_space<vmem>>, vector<1x8x384xf32>
    %210 = vector.shape_cast %209 : vector<1x8x384xf32> to vector<8x384xf32>
    %211 = vector.shape_cast %208 : vector<8x384xf32> to vector<1x8x384xf32>
    tpu.vector_store %arg9[%c2_214, %c0_215, %c0_216], %211 {strides = array<i32>} : memref<3x8x384xf32, #tpu.memory_space<vmem>>, vector<1x8x384xf32>,
    %212 = vector.broadcast %0 : vector<1x384xf32> to vector<8x384xf32>
    %213 = arith.mulf %208, %212 : vector<8x384xf32>
    %cst_217 = arith.constant dense<0.000000e+00> : vector<8xf32>
    %214 = vector.multi_reduction <add>, %213, %cst_217 [1] : vector<8x384xf32> to vector<8xf32>
    %215 = vector.shape_cast %214 : vector<8xf32> to vector<8x1xf32>
    %cst_218 = arith.constant 3.906250e-03 : f32
    %216 = vector.broadcast %cst_218 : f32 to vector<8x1xf32>
    %217 = arith.mulf %215, %216 : vector<8x1xf32>
    %cst_219 = arith.constant dense<0.000000e+00> : vector<8x1xf32>
    %218 = tpu.matmul %1, %217, %cst_219 {dimension_numbers = #tpu.dot_dimension_numbers<[1], [0], [0], [1], [0, 0, 1, 1], [], []>} : vector<8x8xf32>, vector<8x1xf32>, vector<8x1xf32> -> vector<8x1xf32>
    %219 = arith.negf %218 : vector<8x1xf32>
    %220 = math.exp %219 : vector<8x1xf32>
    %cst_220 = arith.constant 1.000000e+00 : f32
    %221 = vector.broadcast %cst_220 : f32 to vector<8x1xf32>
    %222 = arith.addf %221, %220 : vector<8x1xf32>
    %223 = arith.divf %221, %222 : vector<8x1xf32>
    %c0_221 = arith.constant 0 : index
    %c0_222 = arith.constant 0 : index
    %c0_223 = arith.constant 0 : index
    %224 = vector.load %arg9[%c0_221, %c0_222, %c0_223] : memref<3x8x384xf32, #tpu.memory_space<vmem>>, vector<1x8x384xf32>
    %225 = vector.shape_cast %224 : vector<1x8x384xf32> to vector<8x384xf32>
    %226 = vector.broadcast %75 : vector<8x1xf32> to vector<8x384xf32>
    %227 = arith.mulf %225, %226 : vector<8x384xf32>
    %c1_224 = arith.constant 1 : index
    %c0_225 = arith.constant 0 : index
    %c0_226 = arith.constant 0 : index
    %228 = vector.load %arg9[%c1_224, %c0_225, %c0_226] : memref<3x8x384xf32, #tpu.memory_space<vmem>>, vector<1x8x384xf32>
    %229 = vector.shape_cast %228 : vector<1x8x384xf32> to vector<8x384xf32>
    %230 = vector.broadcast %149 : vector<8x1xf32> to vector<8x384xf32>
    %231 = arith.mulf %229, %230 : vector<8x384xf32>
    %232 = arith.addf %227, %231 : vector<8x384xf32>
    %c2_227 = arith.constant 2 : index
    %c0_228 = arith.constant 0 : index
    %c0_229 = arith.constant 0 : index
    %233 = vector.load %arg9[%c2_227, %c0_228, %c0_229] : memref<3x8x384xf32, #tpu.memory_space<vmem>>, vector<1x8x384xf32>
    %234 = vector.shape_cast %233 : vector<1x8x384xf32> to vector<8x384xf32>
    %235 = vector.broadcast %223 : vector<8x1xf32> to vector<8x384xf32>
    %236 = arith.mulf %234, %235 : vector<8x384xf32>
    %237 = arith.addf %232, %236 : vector<8x384xf32>
    %cst_230 = arith.constant 0.333333343 : f32
    %238 = vector.broadcast %cst_230 : f32 to vector<8x384xf32>
    %239 = arith.mulf %237, %238 : vector<8x384xf32>
    %c0_231 = arith.constant 0 : index
    %c0_232 = arith.constant 0 : index
    %240 = vector.load %arg5[%c0_231, %c0_232] : memref<8x1xf32, #tpu.memory_space<vmem>>, vector<8x1xf32>
    %241 = vector.broadcast %240 : vector<8x1xf32> to vector<8x384xf32>
    %242 = arith.mulf %239, %241 : vector<8x384xf32>
    %c0_233 = arith.constant 0 : index
    %c0_234 = arith.constant 0 : index
    %243 = vector.load %arg6[%c0_233, %c0_234] : memref<8x1xf32, #tpu.memory_space<vmem>>, vector<8x1xf32>
    %244 = vector.broadcast %243 : vector<8x1xf32> to vector<8x384xf32>
    %245 = arith.addf %242, %244 : vector<8x384xf32>
    %cst_235 = arith.constant 0.000000e+00 : f32
    %246 = vector.broadcast %cst_235 : f32 to vector<8x384xf32>
    %247 = arith.maximumf %245, %246 : vector<8x384xf32>
    %c0_236 = arith.constant 0 : index
    %c0_237 = arith.constant 0 : index
    %c0_238 = arith.constant 0 : index
    %248 = vector.load %arg8[%c0_236, %c0_237, %c0_238] : memref<1x8x384xf32, #tpu.memory_space<vmem>>, vector<1x8x384xf32>
    %249 = vector.shape_cast %248 : vector<1x8x384xf32> to vector<8x384xf32>
    %250 = vector.shape_cast %247 : vector<8x384xf32> to vector<1x8x384xf32>
    tpu.vector_store %arg8[%c0_236, %c0_237, %c0_238], %250 {strides = array<i32>} : memref<1x8x384xf32, #tpu.memory_space<vmem>>, vector<1x8x384xf32>,
    return
  }
  func.func @transform_0(%arg0: i32) -> (i32, i32, i32) {
    %c0_i32 = arith.constant 0 : i32
    %c0_i32_0 = arith.constant 0 : i32
    %c0_i32_1 = arith.constant 0 : i32
    return %arg0, %c0_i32, %c0_i32_0 : i32, i32, i32
  }
  func.func @transform_1(%arg0: i32) -> (i32, i32, i32, i32) {
    %c0_i32 = arith.constant 0 : i32
    %c0_i32_0 = arith.constant 0 : i32
    %c0_i32_1 = arith.constant 0 : i32
    %c0_i32_2 = arith.constant 0 : i32
    %c0_i32_3 = arith.constant 0 : i32
    return %c0_i32, %c0_i32_0, %c0_i32_1, %c0_i32_2 : i32, i32, i32, i32
  }
  func.func @transform_2(%arg0: i32) -> (i32, i32, i32) {
    %c0_i32 = arith.constant 0 : i32
    %c0_i32_0 = arith.constant 0 : i32
    %c0_i32_1 = arith.constant 0 : i32
    %c0_i32_2 = arith.constant 0 : i32
    return %c0_i32, %c0_i32_0, %c0_i32_1 : i32, i32, i32
  }
  func.func @transform_3(%arg0: i32) -> (i32, i32) {
    %c0_i32 = arith.constant 0 : i32
    %c0_i32_0 = arith.constant 0 : i32
    %c0_i32_1 = arith.constant 0 : i32
    return %c0_i32, %c0_i32_0 : i32, i32
  }
  func.func @transform_4(%arg0: i32) -> (i32, i32) {
    %c0_i32 = arith.constant 0 : i32
    %c0_i32_0 = arith.constant 0 : i32
    %c0_i32_1 = arith.constant 0 : i32
    return %c0_i32, %c0_i32_0 : i32, i32
  }
  func.func @transform_5(%arg0: i32) -> (i32, i32) {
    %c0_i32 = arith.constant 0 : i32
    %c0_i32_0 = arith.constant 0 : i32
    %c0_i32_1 = arith.constant 0 : i32
    return %c0_i32, %c0_i32_0 : i32, i32
  }
  func.func @transform_6(%arg0: i32) -> (i32, i32) {
    %c0_i32 = arith.constant 0 : i32
    %c0_i32_0 = arith.constant 0 : i32
    %c0_i32_1 = arith.constant 0 : i32
    return %c0_i32, %c0_i32_0 : i32, i32
  }
  func.func @transform_7(%arg0: i32) -> (i32, i32, i32) {
    %c0_i32 = arith.constant 0 : i32
    %c0_i32_0 = arith.constant 0 : i32
    %c0_i32_1 = arith.constant 0 : i32
    return %arg0, %c0_i32, %c0_i32_0 : i32, i32, i32
  }
}

</mosaic_0001>

<bundles_post_ra>
// kernel: tpu_custom_call.1
= control target key start
LH: loop header
LB: loop body
LE: loop exit
PB: predicated region body
PF: predicated region fallthrough
CT: control target
= control target key end

     0   :  { %12 = vsyncpa [#allocation4], 0  ;;  %s6809_s0 = inlined_call_operand.vmem [shape: f32[2,4,640], index: 0, kind: input, shape index: {}]   ;;  %s6810_s1 = inlined_call_operand.vmem [shape: f32[3,9,8,4], index: 1, kind: input, shape index: {}]   ;;  %s6811_s2 = inlined_call_operand.vmem [shape: f32[3,8,1], index: 2, kind: input, shape index: {}]   ;;  %s6812_s3 = inlined_call_operand.vmem [shape: f32[8,8], index: 3, kind: input, shape index: {}]   ;;  %s6813_s4 = inlined_call_operand.vmem [shape: f32[8,1], index: 4, kind: input, shape index: {}]   ;;  %s6814_s5 = inlined_call_operand.vmem [shape: f32[8,1], index: 5, kind: input, shape index: {}]   ;;  %s6815_s6 = inlined_call_operand.vmem [shape: f32[1,384], index: 6, kind: input, shape index: {}]   ;;  %s6816_s7 = inlined_call_operand.hbm [shape: f32[2,8,384], index: 7, kind: output, shape index: {}]  }
   0x1   :  { %14 = vsyncpa [#allocation4 + $0x1], 0  ;;  %s5961_s24 = smov 0   ;;  %s5963_s25 = smov 0  }
   0x2   :  { %s5965_s26 = smov 0   ;;  %s5967_s27 = smov 0  }
   0x3 LB: > { %s5982_s28 = sadd.s32 4294967295, %s5891_s27   ;;  %s5355_s29 = sadd.s32 4294967294, %s5891_s27   ;;  %s5891_s27 = sphi %s5967_s27, %s6822_s27   ;;  %s5887_s26 = sphi %s5965_s26, %s6821_s26   ;;  %s5883_s25 = sphi %s5963_s25, %s6820_s25   ;;  %s5879_s24 = sphi %s5961_s24, %s6819_s24  }
   0x4   : > { %s5986_s30 = sadd.s32 1, %s5891_s27   ;;  %s179_s8 = sadd.s32 1, %s5887_s26 }
   0x5   : > { %s176_s9 = ssub.s32 %s5891_s27, %s5986_s30  ;;  %p189_p0 = scmp.ne.s32.totalorder %s5887_s26, %s5883_s25 }
   0x6   : > { %p177_p1 = scmp.eq.s32.totalorder %s176_s9, 0  ;;  %p190_p2 = scmp.eq.s32.totalorder %s5982_s28, 1 }
   0x7   : > { %p195_p3 = scmp.ne.s32.totalorder %s5883_s25, %s5879_s24  ;;  %p196_p4 = scmp.eq.s32.totalorder %s5355_s29, 1 }
   0x8   : > { %s5997_s10 = scalar_select %p177_p1, %s5887_s26, %s179_s8  }
   0x9   : > { %p5999_p5 = por %p190_p2, %p189_p0  ;;  %p6003_p6 = por %p196_p4, %p195_p3 }
   0xa   : > { %p5358_p7 = scmp.ge.s32.totalorder %s5891_s27, 1  ;;  %p240_p8 = scmp.lt.s32.totalorder %s5891_s27, 3 }
   0xc   : > { %p241_p9 = pnand %p5358_p7, %p240_p8 }
   0xd   : > { %p272_p10 = scmp.lt.s32.totalorder (!%p241_p9), %s5982_s28, 1  ;;  %s5894_s18 = smov (!%p241_p9), 81  }
   0xe   : > { %244 = sbr.rel (%p241_p9) target bundleno = 1687 (0x697), region = 48  ;;  %s5896_s19 = smov (!%p241_p9), 82  }
   0xf   : > { %s5897_s20 = smov (!%p241_p9), 80   ;;  %s5898_s21 = smov (!%p241_p9), 60  }
  0x10   : > { %s5899_s22 = smov (!%p241_p9), 59   ;;  %s5901_s23 = smov (!%p241_p9), 58  }
  0x11   : > { %s5902_s29 = smov (!%p241_p9), 38   ;;  %s5903_s8 = smov (!%p241_p9), 37  }
  0x12   : > { %s5904_s9 = smov (!%p241_p9), 36   ;;  %s5905_s15 = smov (!%p241_p9), 101  }
  0x13   : > { %s273_s13 = scalar_select %p272_p10, %s5982_s28, 1  ;;  %v5893_v0 = vmov 0.0   ;;  %vm5895_vm0 = vmmov 0   ;;  %v5900_v5 = vmov 0   ;;  %v1825_v6 = vld [vmem:[%s6811_s2] sm:$0xff]  ;;  %vm296_vm1 = vcmask 662528  }
  0x14   : > { %5592 = vmatprep.subr.mxu1 %v5893_v0  ;;  %375 = vmatprep.mubr.f32.mxu0 %v5893_v0  ;;  %s5906_s16 = smov 103   ;;  %vm304_vm2 = vcmask 1043456   ;;  %vm460_vm3 = vcmask 670720   ;;  %v5360_v16 = vld [vmem:[%s6810_s1 + $0x8] sm:$0xff]  ;;  %vm300_vm4 = vcmask 31744   ;;  %v279_v21 = vld [vmem:[%s6810_s1] sm:$0xff] }
  0x15   : > { %s5743_s14 = smul.u32 20, %s273_s13  ;;  %5594 = vmatprep.mubr.msk.f32.mxu1 %vm5895_vm0, %v5893_v0  ;;  %5811 = vset.pattern.permute.xlu0 %v5900_v5  ;;  %vm630_vm5 = vcmask 654336   ;;  %v5371_v28 = vld [vmem:[%s6810_s1 + $0x10] sm:$0xff]  ;;  %vm803_vm6 = vcmask 490496   ;;  %v5377_v36 = vld [vmem:[%s6810_s1 + $0x18] sm:$0xff]  ;;  %vm976_vm7 = vcmask 482304  }
  0x16   : > { %5812 = vset.pattern.permute.xlu1 %v5900_v5  ;;  %v5383_v44 = vld [vmem:[%s6810_s1 + $0x20] sm:$0xff]  ;;  %vm1149_vm8 = vcmask 474112   ;;  %v5389_v52 = vld [vmem:[%s6810_s1 + $0x28] sm:$0xff]  ;;  %vm1322_vm9 = vcmask 310272   ;;  %v5395_v60 = vld [vmem:[%s6810_s1 + $0x30] sm:$0xff]  ;;  %s5912_s13 = smov 13  }
  0x17   : > { %s6016_s17 = scalar_lea.vmem %s6809_s0, %s5743_s14  ;;  %vm1495_vm10 = vcmask 302080   ;;  %vm1668_vm11 = vcmask 293888   ;;  %vm1959_vm12 = vcmask 842752   ;;  %vm2121_vm13 = vcmask 859136  }
  0x18   : > { %v6019_v1 = vld [vmem:[%s6016_s17 + $0x8] sm:$0xff]  ;;  %v6022_v2 = vld [vmem:[%s6016_s17] sm:$0xff]  ;;  %vm2291_vm14 = vcmask 826368   ;;  %vm2464_vm15 = vcmask 498688  }
  0x19   : > { %292 = vrot.lane.b32.xlu0 %v6019_v1, %s5894_s18  ;;  %288 = vrot.lane.b32.xlu1 %v6022_v2, %s5894_s18  ;;  %v6028_v3 = vcombine.high %v6022_v2, %v6022_v2  ;;  %v6036_v4 = vcombine.high %v6019_v1, %v6019_v1 }
  0x1d   : > { %456 = vrot.lane.b32.xlu0 %v6019_v1, %s5896_s19  ;;  %454 = vrot.lane.b32.xlu1 %v6028_v3, %s5896_s19 }
  0x21   : > { %294 = vrot.lane.b32.xlu1 %v6036_v4, %s5894_s18  ;;  %290 = vrot.lane.b32.xlu0 %v6028_v3, %s5894_s18  ;;  %s5907_s18 = smov 61  }
  0x25   : > { %624 = vrot.lane.b32.xlu1 %v6028_v3, %s5897_s20  ;;  %452 = vrot.lane.b32.xlu0 %v6022_v2, %s5896_s19 }
  0x29   : > { %458 = vrot.lane.b32.xlu1 %v6036_v4, %s5896_s19  ;;  %626 = vrot.lane.b32.xlu0 %v6019_v1, %s5897_s20  ;;  %s5908_s19 = smov 105  }
  0x2d   : > { %797 = vrot.lane.b32.xlu1 %v6028_v3, %s5898_s21  ;;  %622 = vrot.lane.b32.xlu0 %v6022_v2, %s5897_s20 }
  0x31   : > { %628 = vrot.lane.b32.xlu1 %v6036_v4, %s5897_s20  ;;  %799 = vrot.lane.b32.xlu0 %v6019_v1, %s5898_s21  ;;  %s5909_s20 = smov 57  }
  0x35   : > { %970 = vrot.lane.b32.xlu1 %v6028_v3, %s5899_s22  ;;  %795 = vrot.lane.b32.xlu0 %v6022_v2, %s5898_s21 }
  0x39   : > { %801 = vrot.lane.b32.xlu1 %v6036_v4, %s5898_s21  ;;  %972 = vrot.lane.b32.xlu0 %v6019_v1, %s5899_s22  ;;  %s5910_s21 = smov 17  }
  0x3d   : > { %1143 = vrot.lane.b32.xlu1 %v6028_v3, %s5901_s23  ;;  %968 = vrot.lane.b32.xlu0 %v6022_v2, %s5899_s22 }
  0x41   : > { %974 = vrot.lane.b32.xlu1 %v6036_v4, %s5899_s22  ;;  %1145 = vrot.lane.b32.xlu0 %v6019_v1, %s5901_s23 }
  0x45   : > { %1316 = vrot.lane.b32.xlu1 %v6028_v3, %s5902_s29  ;;  %1141 = vrot.lane.b32.xlu0 %v6022_v2, %s5901_s23 }
  0x49   : > { %1147 = vrot.lane.b32.xlu1 %v6036_v4, %s5901_s23  ;;  %1318 = vrot.lane.b32.xlu0 %v6019_v1, %s5902_s29  ;;  %s5920_s23 = smov [#allocation3]  }
  0x4d   : > { %1489 = vrot.lane.b32.xlu1 %v6028_v3, %s5903_s8  ;;  %1314 = vrot.lane.b32.xlu0 %v6022_v2, %s5902_s29 }
  0x51   : > { %1320 = vrot.lane.b32.xlu1 %v6036_v4, %s5902_s29  ;;  %1491 = vrot.lane.b32.xlu0 %v6019_v1, %s5903_s8  ;;  %s5911_s29 = smov 15  }
  0x55   : > { %1662 = vrot.lane.b32.xlu1 %v6028_v3, %s5904_s9  ;;  %1487 = vrot.lane.b32.xlu0 %v6022_v2, %s5903_s8 }
  0x59   : > { %1493 = vrot.lane.b32.xlu1 %v6036_v4, %s5903_s8  ;;  %1664 = vrot.lane.b32.xlu0 %v6019_v1, %s5904_s9  ;;  %s5835_s8 = sshll.u32 %s5920_s23, 4  ;;  %s5836_s8 = int_to_ptr.vmem [resolvable:$false] %s5835_s8 }
  0x5d   : > { %1666 = vrot.lane.b32.xlu1 %v6036_v4, %s5904_s9  ;;  %1660 = vrot.lane.b32.xlu0 %v6022_v2, %s5904_s9 }
  0x61   : > { %1828 = vperm.xlu0 %5811, %v1825_v6   ;;  %2287 = vrot.lane.b32.xlu1 %v6019_v1, %s5905_s15 }
  0x65   : > { %1953 = vrot.lane.b32.xlu0 %v6028_v3, %s5906_s16  ;;  %2289 = vrot.lane.b32.xlu1 %v6036_v4, %s5905_s15 }
  0x69   : > { %1955 = vrot.lane.b32.xlu0 %v6019_v1, %s5906_s16  ;;  %2631 = vrot.lane.b32.xlu1 %v6028_v3, %s5899_s22 }
  0x6d   : > { %1951 = vrot.lane.b32.xlu0 %v6022_v2, %s5906_s16  ;;  %2462 = vrot.lane.b32.xlu1 %v6036_v4, %s5907_s18 }
  0x71   : > { %2115 = vrot.lane.b32.xlu0 %v6028_v3, %s5908_s19  ;;  %2803 = vrot.lane.b32.xlu1 %v6028_v3, %s5909_s20 }
  0x75   : > { %2117 = vrot.lane.b32.xlu0 %v6019_v1, %s5908_s19  ;;  %2635 = vrot.lane.b32.xlu1 %v6036_v4, %s5899_s22 }
  0x79   : > { %1957 = vrot.lane.b32.xlu0 %v6036_v4, %s5906_s16  ;;  %2976 = vrot.lane.b32.xlu1 %v6028_v3, %s5910_s21  ;;  %s5918_s16 = smov 121  }
  0x7d   : > { %2113 = vrot.lane.b32.xlu0 %v6022_v2, %s5908_s19  ;;  %2807 = vrot.lane.b32.xlu1 %v6036_v4, %s5909_s20 }
  0x81   : > { %2285 = vrot.lane.b32.xlu0 %v6028_v3, %s5905_s15 }
  0x85   : > { %2119 = vrot.lane.b32.xlu0 %v6036_v4, %s5908_s19  ;;  %s5913_s19 = smov 125  }
  0x89   : > { %2283 = vrot.lane.b32.xlu0 %v6022_v2, %s5905_s15  ;;  %s269_s15 = sand.u32 1, %s5883_s25  }
  0x8b   : > { %v293_v7 = vpop.permute.xlu0 %292  ;;  %v289_v8 = vpop.permute.xlu1 %288 }
  0x8d   : > { %2458 = vrot.lane.b32.xlu0 %v6028_v3, %s5907_s18 }
  0x8f   : > { %v457_v9 = vpop.permute.xlu0 %456  ;;  %v455_v10 = vpop.permute.xlu1 %454 }
  0x90   : > { %v462_v17 = vsel %vm460_vm3, %v455_v10, %v457_v9 }
  0x91   : > { %2460 = vrot.lane.b32.xlu0 %v6019_v1, %s5907_s18 }
  0x93   : > { %v295_v11 = vpop.permute.xlu1 %294  ;;  %v291_v12 = vpop.permute.xlu0 %290 }
  0x94   : > { %v298_v13 = vsel %vm296_vm1, %v291_v12, %v293_v7  ;;  %v299_v14 = vsel %vm296_vm1, %v293_v7, %v295_v11  ;;  %v297_v15 = vsel %vm296_vm1, %v289_v8, %v291_v12  ;;  %vm2809_vm1 = vcmask 465920  }
  0x95   : > { %5361 = vmatprep.subr.msk.mxu0 %vm304_vm2, %v298_v13  ;;  %5593 = vmatpush3.msk.msra.mxu1 %vm304_vm2, %v299_v14 }
  0x96   : > { %5362 = vmatpush1.msk.msra.mxu0 %vm304_vm2, %v297_v15  ;;  %5597 = vmatprep.subr.mxu1 %v5893_v0 }
  0x97   : > { %v625_v18 = vpop.permute.xlu1 %624  ;;  %5366 = vmatprep.subr.msk.mxu0 %vm304_vm2, %v462_v17  ;;  %v453_v19 = vpop.permute.xlu0 %452  ;;  %5363 = vmatmul.mubr.msk.f32.vlgmr.msra.gmra.mxu0 %vm300_vm4, %v5360_v16 }
  0x98   : > { %v461_v20 = vsel %vm460_vm3, %v453_v19, %v455_v10  ;;  %5595 = vmatmul.mubr.msk.f32.vlgmr.msra.gmra.mxu1 %vm300_vm4, %v5360_v16  ;;  %537 = vmatprep.mubr.f32.mxu0 %v5893_v0  ;;  %v5407_v16 = vld [vmem:[%s6810_s1 + $0x40] sm:$0xff] }
  0x99   : > { %5367 = vmatpush1.msk.msra.mxu0 %vm304_vm2, %v461_v20  ;;  %5599 = vmatprep.mubr.msk.f32.mxu1 %vm5895_vm0, %v5893_v0 }
  0x9a   : > { %2456 = vrot.lane.b32.xlu0 %v6022_v2, %s5907_s18  ;;  %s5919_s18 = smov 118  }
  0x9b   : > { %v459_v22 = vpop.permute.xlu1 %458  ;;  %v627_v23 = vpop.permute.xlu0 %626  ;;  %5368 = vmatmul.mubr.msk.f32.vlgmr.msra.gmra.mxu0 %vm300_vm4, %v279_v21 }
  0x9c   : > { %v463_v24 = vsel %vm460_vm3, %v457_v9, %v459_v22  ;;  %v632_v25 = vsel %vm630_vm5, %v625_v18, %v627_v23  ;;  %707 = vmatprep.mubr.f32.mxu0 %v5893_v0  ;;  %vm2982_vm3 = vcmask 138240  }
  0x9d   : > { %5598 = vmatpush3.msk.msra.mxu1 %vm304_vm2, %v463_v24  ;;  %5372 = vmatprep.subr.msk.mxu0 %vm304_vm2, %v632_v25 }
  0x9e   : > { %5602 = vmatprep.subr.mxu1 %v5893_v0  ;;  %5600 = vmatmul.mubr.msk.f32.vlgmr.msra.gmra.mxu1 %vm300_vm4, %v279_v21 }
  0x9f   : > { %v798_v26 = vpop.permute.xlu1 %797  ;;  %v623_v27 = vpop.permute.xlu0 %622  ;;  %5604 = vmatprep.mubr.msk.f32.mxu1 %vm5895_vm0, %v5893_v0  ;;  %2633 = vrot.lane.b32.xlu0 %v6019_v1, %s5899_s22 }
  0xa0   : > { %v631_v29 = vsel %vm630_vm5, %v623_v27, %v625_v18 }
  0xa1   : > { %5373 = vmatpush1.msk.msra.mxu0 %vm304_vm2, %v631_v29 }
  0xa2   : > { %5374 = vmatmul.mubr.msk.f32.vlgmr.msra.gmra.mxu0 %vm300_vm4, %v5371_v28 }
  0xa3   : > { %v629_v30 = vpop.permute.xlu1 %628  ;;  %v800_v31 = vpop.permute.xlu0 %799  ;;  %880 = vmatprep.mubr.f32.mxu0 %v5893_v0  ;;  %2629 = vrot.lane.b32.xlu0 %v6022_v2, %s5899_s22 }
  0xa4   : > { %v633_v32 = vsel %vm630_vm5, %v627_v23, %v629_v30  ;;  %v805_v33 = vsel %vm803_vm6, %v798_v26, %v800_v31  ;;  %vm1861_vm5 = vcmask 64512  }
  0xa5   : > { %5603 = vmatpush3.msk.msra.mxu1 %vm304_vm2, %v633_v32  ;;  %5378 = vmatprep.subr.msk.mxu0 %vm304_vm2, %v805_v33 }
  0xa6   : > { %5607 = vmatprep.subr.mxu1 %v5893_v0  ;;  %5605 = vmatmul.mubr.msk.f32.vlgmr.msra.gmra.mxu1 %vm300_vm4, %v5371_v28 }
  0xa7   : > { %v971_v34 = vpop.permute.xlu1 %970  ;;  %v796_v35 = vpop.permute.xlu0 %795  ;;  %5609 = vmatprep.mubr.msk.f32.mxu1 %vm5895_vm0, %v5893_v0  ;;  %2805 = vrot.lane.b32.xlu0 %v6019_v1, %s5909_s20 }
  0xa8   : > { %v804_v37 = vsel %vm803_vm6, %v796_v35, %v798_v26 }
  0xa9   : > { %5379 = vmatpush1.msk.msra.mxu0 %vm304_vm2, %v804_v37 }
  0xaa   : > { %5380 = vmatmul.mubr.msk.f32.vlgmr.msra.gmra.mxu0 %vm300_vm4, %v5377_v36 }
  0xab   : > { %v802_v38 = vpop.permute.xlu1 %801  ;;  %v973_v39 = vpop.permute.xlu0 %972  ;;  %1053 = vmatprep.mubr.f32.mxu0 %v5893_v0  ;;  %2801 = vrot.lane.b32.xlu0 %v6022_v2, %s5909_s20  ;;  %s5917_s20 = smov 124  }
  0xac   : > { %v806_v40 = vsel %vm803_vm6, %v800_v31, %v802_v38  ;;  %v978_v41 = vsel %vm976_vm7, %v971_v34, %v973_v39  ;;  %vm3155_vm6 = vcmask 121856  }
  0xad   : > { %5608 = vmatpush3.msk.msra.mxu1 %vm304_vm2, %v806_v40  ;;  %5384 = vmatprep.subr.msk.mxu0 %vm304_vm2, %v978_v41 }
  0xae   : > { %5612 = vmatprep.subr.mxu1 %v5893_v0  ;;  %5610 = vmatmul.mubr.msk.f32.vlgmr.msra.gmra.mxu1 %vm300_vm4, %v5377_v36 }
  0xaf   : > { %v1144_v42 = vpop.permute.xlu1 %1143  ;;  %v969_v43 = vpop.permute.xlu0 %968  ;;  %5614 = vmatprep.mubr.msk.f32.mxu1 %vm5895_vm0, %v5893_v0  ;;  %2978 = vrot.lane.b32.xlu0 %v6019_v1, %s5910_s21 }
  0xb0   : > { %v977_v45 = vsel %vm976_vm7, %v969_v43, %v971_v34 }
  0xb1   : > { %5385 = vmatpush1.msk.msra.mxu0 %vm304_vm2, %v977_v45 }
  0xb2   : > { %5386 = vmatmul.mubr.msk.f32.vlgmr.msra.gmra.mxu0 %vm300_vm4, %v5383_v44 }
  0xb3   : > { %v975_v46 = vpop.permute.xlu1 %974  ;;  %v1146_v47 = vpop.permute.xlu0 %1145  ;;  %1226 = vmatprep.mubr.f32.mxu0 %v5893_v0  ;;  %2974 = vrot.lane.b32.xlu0 %v6022_v2, %s5910_s21 }
  0xb4   : > { %v979_v48 = vsel %vm976_vm7, %v973_v39, %v975_v46  ;;  %v1151_v49 = vsel %vm1149_vm8, %v1144_v42, %v1146_v47 }
  0xb5   : > { %5613 = vmatpush3.msk.msra.mxu1 %vm304_vm2, %v979_v48  ;;  %5390 = vmatprep.subr.msk.mxu0 %vm304_vm2, %v1151_v49 }
  0xb6   : > { %5615 = vmatmul.mubr.msk.f32.vlgmr.msra.gmra.mxu1 %vm300_vm4, %v5383_v44  ;;  %5617 = vmatprep.subr.mxu1 %v5893_v0 }
  0xb7   : > { %v1317_v50 = vpop.permute.xlu1 %1316  ;;  %v1142_v51 = vpop.permute.xlu0 %1141  ;;  %5619 = vmatprep.mubr.msk.f32.mxu1 %vm5895_vm0, %v5893_v0  ;;  %3151 = vrot.lane.b32.xlu0 %v6019_v1, %s5911_s29 }
  0xb8   : > { %v1150_v53 = vsel %vm1149_vm8, %v1142_v51, %v1144_v42  ;;  %v6274_v42 = vld [vmem:[%s6810_s1 + $0x50] sm:$0xff] }
  0xb9   : > { %5391 = vmatpush1.msk.msra.mxu0 %vm304_vm2, %v1150_v53 }
  0xba   : > { %5392 = vmatmul.mubr.msk.f32.vlgmr.msra.gmra.mxu0 %vm300_vm4, %v5389_v52 }
  0xbb   : > { %v1148_v54 = vpop.permute.xlu1 %1147  ;;  %v1319_v55 = vpop.permute.xlu0 %1318  ;;  %1399 = vmatprep.mubr.f32.mxu0 %v5893_v0  ;;  %3147 = vrot.lane.b32.xlu0 %v6022_v2, %s5911_s29 }
  0xbc   : > { %v1152_v56 = vsel %vm1149_vm8, %v1146_v47, %v1148_v54  ;;  %v1324_v57 = vsel %vm1322_vm9, %v1317_v50, %v1319_v55  ;;  %v6285_v47 = vld [vmem:[%s6810_s1 + $0x48] sm:$0xff]  ;;  %v6308_v54 = vld [vmem:[%s6810_s1 + $0x60] sm:$0xff]  ;;  %vm3328_vm8 = vcmask 105472  }
  0xbd   : > { %5618 = vmatpush3.msk.msra.mxu1 %vm304_vm2, %v1152_v56  ;;  %5396 = vmatprep.subr.msk.mxu0 %vm304_vm2, %v1324_v57 }
  0xbe   : > { %5620 = vmatmul.mubr.msk.f32.vlgmr.msra.gmra.mxu1 %vm300_vm4, %v5389_v52  ;;  %5622 = vmatprep.subr.mxu1 %v5893_v0 }
  0xbf   : > { %v1490_v58 = vpop.permute.xlu1 %1489  ;;  %v1315_v59 = vpop.permute.xlu0 %1314  ;;  %5624 = vmatprep.mubr.msk.f32.mxu1 %vm5895_vm0, %v5893_v0  ;;  %3324 = vrot.lane.b32.xlu0 %v6019_v1, %s5912_s13  ;;  %v5469_v1 = vld [vmem:[%s6811_s2 + $0x8] sm:$0xff] }
  0xc0   : > { %v1323_v61 = vsel %vm1322_vm9, %v1315_v59, %v1317_v50  ;;  %v6296_v50 = vld [vmem:[%s6810_s1 + $0x58] sm:$0xff]  ;;  %v6322_v59 = vld [vmem:[%s6810_s1 + $0x68] sm:$0xff] }
  0xc1   : > { %5397 = vmatpush1.msk.msra.mxu0 %vm304_vm2, %v1323_v61 }
  0xc2   : > { %5398 = vmatmul.mubr.msk.f32.vlgmr.msra.gmra.mxu0 %vm300_vm4, %v5395_v60 }
  0xc3   : > { %v1321_v62 = vpop.permute.xlu1 %1320  ;;  %v1492_v63 = vpop.permute.xlu0 %1491  ;;  %1572 = vmatprep.mubr.f32.mxu0 %v5893_v0  ;;  %3320 = vrot.lane.b32.xlu0 %v6022_v2, %s5912_s13  ;;  %v5401_v2 = vld [vmem:[%s6810_s1 + $0x38] sm:$0xff] }
  0xc4   : > { %v1325_v5 = vsel %vm1322_vm9, %v1319_v55, %v1321_v62  ;;  %v1497_v6 = vsel %vm1495_vm10, %v1490_v58, %v1492_v63  ;;  %vm3602_vm9 = vcmask 1022976  }
  0xc5   : > { %5623 = vmatpush3.msk.msra.mxu1 %vm304_vm2, %v1325_v5  ;;  %5402 = vmatprep.subr.msk.mxu0 %vm304_vm2, %v1497_v6  ;;  %v6335_v5 = vld [vmem:[%s6810_s1 + $0x70] sm:$0xff] }
  0xc6   : > { %5625 = vmatmul.mubr.msk.f32.vlgmr.msra.gmra.mxu1 %vm300_vm4, %v5395_v60  ;;  %5627 = vmatprep.subr.mxu1 %v5893_v0 }
  0xc7   : > { %v1663_v7 = vpop.permute.xlu1 %1662  ;;  %v1488_v8 = vpop.permute.xlu0 %1487  ;;  %5629 = vmatprep.mubr.msk.f32.mxu1 %vm5895_vm0, %v5893_v0  ;;  %3489 = vperm.xlu0 %5811, %v5469_v1  }
  0xc8   : > { %v1496_v9 = vsel %vm1495_vm10, %v1488_v8, %v1490_v58 }
  0xc9   : > { %5403 = vmatpush1.msk.msra.mxu0 %vm304_vm2, %v1496_v9 }
  0xca   : > { %5404 = vmatmul.mubr.msk.f32.vlgmr.msra.gmra.mxu0 %vm300_vm4, %v5401_v2 }
  0xcb   : > { %v1494_v10 = vpop.permute.xlu1 %1493  ;;  %v1665_v11 = vpop.permute.xlu0 %1664  ;;  %1745 = vmatprep.mubr.f32.mxu0 %v5893_v0 }
  0xcc   : > { %v1498_v12 = vsel %vm1495_vm10, %v1492_v63, %v1494_v10  ;;  %v1670_v13 = vsel %vm1668_vm11, %v1663_v7, %v1665_v11  ;;  %vm3923_vm10 = vcmask 998400  }
  0xcd   : > { %5628 = vmatpush3.msk.msra.mxu1 %vm304_vm2, %v1498_v12  ;;  %5408 = vmatprep.subr.msk.mxu0 %vm304_vm2, %v1670_v13 }
  0xce   : > { %5630 = vmatmul.mubr.msk.f32.vlgmr.msra.gmra.mxu1 %vm300_vm4, %v5401_v2  ;;  %5632 = vmatprep.subr.mxu1 %v5893_v0 }
  0xcf   : > { %v1667_v14 = vpop.permute.xlu1 %1666  ;;  %v1661_v15 = vpop.permute.xlu0 %1660  ;;  %5634 = vmatprep.mubr.msk.f32.mxu1 %vm5895_vm0, %v5893_v0 }
  0xd0   : > { %v1671_v17 = vsel %vm1668_vm11, %v1665_v11, %v1667_v14  ;;  %v1669_v18 = vsel %vm1668_vm11, %v1661_v15, %v1663_v7  ;;  %vm4096_vm11 = vcmask 506880  }
  0xd1   : > { %5409 = vmatpush1.msk.msra.mxu0 %vm304_vm2, %v1669_v18  ;;  %5633 = vmatpush3.msk.msra.mxu1 %vm304_vm2, %v1671_v17 }
  0xd2   : > { %5410 = vmatmul.mubr.msk.f32.vlgmr.msra.gmra.mxu0 %vm300_vm4, %v5407_v16  ;;  %5635 = vmatmul.mubr.msk.f32.vlgmr.msra.gmra.mxu1 %vm300_vm4, %v5407_v16 }
  0xd3   : > { %2036 = vmatprep.mubr.f32.mxu1 %v5893_v0  ;;  %5637 = vmatprep.subr.mxu0 %v5893_v0  ;;  %v2288_v41 = vpop.permute.xlu1 %2287 }
  0xd4   : > { %5639 = vmatprep.mubr.msk.f32.mxu0 %vm5895_vm0, %v5893_v0 }
  0xd7   : > { %v2290_v46 = vpop.permute.xlu1 %2289 }
  0xd8   : > { %v6287_v48 = vsel %vm2291_vm14, %v2288_v41, %v2290_v46 }
  0xdb   : > { %v2632_v52 = vpop.permute.xlu1 %2631 }
  0xdc   : > { %v6262_v19 = vpop.permute.xlu0 %1828 }
  0xdf   : > { %v2463_v57 = vpop.permute.xlu1 %2462 }
  0xe0   : > { %v1954_v20 = vpop.permute.xlu0 %1953 }
  0xe3   : > { %v2804_v60 = vpop.permute.xlu1 %2803 }
  0xe4   : > { %v1956_v21 = vpop.permute.xlu0 %1955 }
  0xe5   : > { %v1961_v22 = vsel %vm1959_vm12, %v1954_v20, %v1956_v21 }
  0xe6   : > { %5417 = vmatprep.subr.msk.mxu1 %vm304_vm2, %v1961_v22 }
  0xe7   : > { %v2636_v6 = vpop.permute.xlu1 %2635 }
  0xe8   : > { %v1952_v23 = vpop.permute.xlu0 %1951 }
  0xe9   : > { %v1960_v24 = vsel %vm1959_vm12, %v1952_v23, %v1954_v20 }
  0xea   : > { %5418 = vmatpush1.msk.msra.mxu1 %vm304_vm2, %v1960_v24 }
  0xeb   : > { %5419 = vmatmul.mubr.msk.f32.vlgmr.msra.gmra.mxu1 %vm300_vm4, %v6274_v42  ;;  %v2977_v8 = vpop.permute.xlu1 %2976 }
  0xec   : > { %v2116_v25 = vpop.permute.xlu0 %2115  ;;  %2198 = vmatprep.mubr.f32.mxu1 %v5893_v0 }
  0xef   : > { %v2808_v12 = vpop.permute.xlu1 %2807 }
  0xf0   : > { %v2118_v26 = vpop.permute.xlu0 %2117 }
  0xf1   : > { %v2123_v27 = vsel %vm2121_vm13, %v2116_v25, %v2118_v26 }
  0xf2   : > { %5422 = vmatprep.subr.msk.mxu1 %vm304_vm2, %v2123_v27 }
  0xf4   : > { %v1958_v28 = vpop.permute.xlu0 %1957 }
  0xf5   : > { %v6267_v29 = vsel %vm1959_vm12, %v1956_v21, %v1958_v28  ;;  %vm4441_vm12 = vcmask 457728  }
  0xf8   : > { %v2114_v30 = vpop.permute.xlu0 %2113 }
  0xf9   : > { %v2122_v31 = vsel %vm2121_vm13, %v2114_v30, %v2116_v25 }
  0xfa   : > { %5423 = vmatpush1.msk.msra.mxu1 %vm304_vm2, %v2122_v31 }
  0xfb   : > { %5424 = vmatmul.mubr.msk.f32.vlgmr.msra.gmra.mxu1 %vm300_vm4, %v6285_v47 }
  0xfc   : > { %v2286_v32 = vpop.permute.xlu0 %2285  ;;  %2368 = vmatprep.mubr.f32.mxu1 %v5893_v0 }
  0xfd   : > { %v2293_v43 = vsel %vm2291_vm14, %v2286_v32, %v2288_v41 }
  0xfe   : > { %5428 = vmatprep.subr.msk.mxu1 %vm304_vm2, %v2293_v43 }
 0x100   : > { %v2120_v33 = vpop.permute.xlu0 %2119 }
 0x101   : > { %v6269_v34 = vsel %vm2121_vm13, %v2118_v26, %v2120_v33  ;;  %vm4614_vm13 = vcmask 1014784  }
 0x104   : > { %v2284_v35 = vpop.permute.xlu0 %2283 }
 0x105   : > { %v2292_v44 = vsel %vm2291_vm14, %v2284_v35, %v2286_v32  ;;  %vm4960_vm14 = vcmask 965632  }
 0x106   : > { %5429 = vmatpush1.msk.msra.mxu1 %vm304_vm2, %v2292_v44 }
 0x107   : > { %5430 = vmatmul.mubr.msk.f32.vlgmr.msra.gmra.mxu1 %vm300_vm4, %v6296_v50 }
 0x108   : > { %v2459_v36 = vpop.permute.xlu0 %2458  ;;  %2541 = vmatprep.mubr.f32.mxu1 %v5893_v0 }
 0x10c   : > { %v2461_v37 = vpop.permute.xlu0 %2460 }
 0x10d   : > { %v2466_v45 = vsel %vm2464_vm15, %v2459_v36, %v2461_v37  ;;  %v6315_v58 = vsel %vm2464_vm15, %v2461_v37, %v2463_v57 }
 0x10e   : > { %5434 = vmatprep.subr.msk.mxu1 %vm304_vm2, %v2466_v45 }
 0x110   : > { %v2457_v38 = vpop.permute.xlu0 %2456 }
 0x111   : > { %v2465_v51 = vsel %vm2464_vm15, %v2457_v38, %v2459_v36 }
 0x112   : > { %5435 = vmatpush1.msk.msra.mxu1 %vm304_vm2, %v2465_v51 }
 0x113   : > { %5436 = vmatmul.mubr.msk.f32.vlgmr.msra.gmra.mxu1 %vm300_vm4, %v6308_v54 }
 0x114   : > { %v2634_v39 = vpop.permute.xlu0 %2633  ;;  %2713 = vmatprep.mubr.f32.mxu1 %v5893_v0 }
 0x115   : > { %v2638_v53 = vsel %vm976_vm7, %v2632_v52, %v2634_v39  ;;  %v6339_v1 = vsel %vm976_vm7, %v2634_v39, %v2636_v6 }
 0x116   : > { %5440 = vmatprep.subr.msk.mxu1 %vm304_vm2, %v2638_v53 }
 0x118   : > { %v2630_v40 = vpop.permute.xlu0 %2629 }
 0x119   : > { %v2637_v55 = vsel %vm976_vm7, %v2630_v40, %v2632_v52 }
 0x11a   : > { %5441 = vmatpush1.msk.msra.mxu1 %vm304_vm2, %v2637_v55  ;;  %v1838_v55 = vlaneseq }
 0x11b   : > { %5442 = vmatmul.mubr.msk.f32.vlgmr.msra.gmra.mxu1 %vm300_vm4, %v6322_v59 }
 0x11c   : > { %v2806_v49 = vpop.permute.xlu0 %2805  ;;  %2886 = vmatprep.mubr.f32.mxu1 %v5893_v0  ;;  %v1839_v6 = vshrl.u32 %v1838_v55, 7 }
 0x11d   : > { %v2811_v62 = vsel %vm2809_vm1, %v2804_v60, %v2806_v49  ;;  %v6350_v13 = vsel %vm2809_vm1, %v2806_v49, %v2808_v12 }
 0x11e   : > { %5446 = vmatprep.subr.msk.mxu1 %vm304_vm2, %v2811_v62 }
 0x120   : > { %v2802_v56 = vpop.permute.xlu0 %2801 }
 0x121   : > { %v2810_v61 = vsel %vm2809_vm1, %v2802_v56, %v2804_v60 }
 0x122   : > { %5447 = vmatpush1.msk.msra.mxu1 %vm304_vm2, %v2810_v61 }
 0x123   : > { %5448 = vmatmul.mubr.msk.f32.vlgmr.msra.gmra.mxu1 %vm300_vm4, %v6335_v5 }
 0x124   : > { %v6328_v63 = vpop.permute.xlu0 %2978  ;;  %3059 = vmatprep.mubr.f32.mxu1 %v5893_v0 }
 0x125   : > { %v2984_v9 = vsel %vm2982_vm3, %v2977_v8, %v6328_v63 }
 0x126   : > { %5452 = vmatprep.subr.msk.mxu1 %vm304_vm2, %v2984_v9 }
 0x128   : > { %v2975_v7 = vpop.permute.xlu0 %2974 }
 0x129   : > { %v2983_v2 = vsel %vm2982_vm3, %v2975_v7, %v2977_v8 }
 0x12a   : > { %5453 = vmatpush1.msk.msra.mxu1 %vm304_vm2, %v2983_v2 }
 0x157   : > { %v377_v10 = vpop.f32.mrf.mxu0 }
 0x158   : > { %v448_v11 = vpop.f32.mrf.mxu1 }
 0x159   : > { %v379_v15 = vpop.f32.mrf.mxu0 }
 0x15a   : > { %v5596_v14 = vpop.f32.mrf.mxu1 }
 0x15b   : > { %v539_v17 = vpop.f32.mrf.mxu0 }
 0x15c   : > { %v540_v35 = vadd.f32 %v539_v17, %v377_v10 }
 0x15d   : > { %v541_v20 = vpop.f32.mrf.mxu0 }
 0x15e   : > { %v610_v16 = vpop.f32.mrf.mxu1  ;;  %v542_v40 = vadd.f32 %v541_v20, %v379_v15 }
 0x15f   : > { %v611_v36 = vadd.f32 %v610_v16, %v448_v11  ;;  %v1840_v16 = vsub.s32 0, %v1839_v6 }
 0x160   : > { %v5601_v18 = vpop.f32.mrf.mxu1 }
 0x162   : > { %v709_v22 = vpop.f32.mrf.mxu0 }
 0x163   : > { %v784_v41 = vadd.f32 %v709_v22, %v540_v35  ;;  %v277_v22 = vld [vmem:[%s6815_s6] sm:$0x7] }
 0x164   : > { %v711_v24 = vpop.f32.mrf.mxu0 }
 0x165   : > { %v785_v45 = vadd.f32 %v711_v24, %v542_v40 }
 0x166   : > { %v780_v21 = vpop.f32.mrf.mxu1 }
 0x167   : > { %v786_v43 = vadd.f32 %v780_v21, %v611_v36  ;;  %v1844_v21 = vsub.s32 1, %v1839_v6 }
 0x168   : > { %v5606_v23 = vpop.f32.mrf.mxu1 }
 0x169   : > { %v6360_v36 = vrot.slane %v277_v22, %v1844_v21 }
 0x16a   : > { %v882_v26 = vpop.f32.mrf.mxu0 }
 0x16b   : > { %v957_v46 = vadd.f32 %v882_v26, %v784_v41 }
 0x16c   : > { %v884_v28 = vpop.f32.mrf.mxu0 }
 0x16d   : > { %v958_v56 = vadd.f32 %v884_v28, %v785_v45  ;;  %v1848_v28 = vsub.s32 2, %v1839_v6 }
 0x16e   : > { %v953_v25 = vpop.f32.mrf.mxu1 }
 0x16f   : > { %v959_v49 = vadd.f32 %v953_v25, %v786_v43 }
 0x170   : > { %v5611_v27 = vpop.f32.mrf.mxu1 }
 0x172   : > { %v1055_v31 = vpop.f32.mrf.mxu0 }
 0x173   : > { %v1130_v57 = vadd.f32 %v1055_v31, %v957_v46  ;;  %v6395_v46 = vld [vmem:[%s6016_s17] sm:$0xff] }
 0x174   : > { %v1057_v33 = vpop.f32.mrf.mxu0 }
 0x175   : > { %v1131_v7 = vadd.f32 %v1057_v33, %v958_v56  ;;  %v6358_v33 = vrot.slane %v277_v22, %v1840_v16 }
 0x176   : > { %v1126_v30 = vpop.f32.mrf.mxu1 }
 0x177   : > { %v1132_v60 = vadd.f32 %v1126_v30, %v959_v49  ;;  %v3589_v49 = vld [vmem:[%s6016_s17 + $0x8] sm:$0xff] }
 0x178   : > { %v5616_v32 = vpop.f32.mrf.mxu1 }
 0x17a   : > { %v1228_v38 = vpop.f32.mrf.mxu0 }
 0x17b   : > { %v1303_v8 = vadd.f32 %v1228_v38, %v1130_v57 }
 0x17c   : > { %v1230_v44 = vpop.f32.mrf.mxu0 }
 0x17d   : > { %v1304_v10 = vadd.f32 %v1230_v44, %v1131_v7  ;;  %v5457_v7 = vld [vmem:[%s6810_s1 + $0x80] sm:$0xff] }
 0x17e   : > { %v1299_v37 = vpop.f32.mrf.mxu1 }
 0x17f   : > { %v1305_v2 = vadd.f32 %v1299_v37, %v1132_v60  ;;  %v6428_v60 = vld [vmem:[%s6812_s3] sm:$0xff] }
 0x180   : > { %v5621_v39 = vpop.f32.mrf.mxu1 }
 0x181   : > { %v6368_v39 = vrot.slane %v277_v22, %v1848_v28  ;;  %v6554_v28 = vld [vmem:[%s6810_s1 + $0x90] sm:$0xff] }
 0x182   : > { %v1401_v51 = vpop.f32.mrf.mxu0 }
 0x183   : > { %v1476_v11 = vadd.f32 %v1401_v51, %v1303_v8  ;;  %v6400_v51 = vcombine.high %v6395_v46, %v6395_v46 }
 0x184   : > { %v1403_v61 = vpop.f32.mrf.mxu0 }
 0x185   : > { %v1477_v17 = vadd.f32 %v1403_v61, %v1304_v10  ;;  %3596 = vrot.lane.b32.xlu0 %v6400_v51, %s5913_s19 }
 0x186   : > { %v1472_v52 = vpop.f32.mrf.mxu1 }
 0x187   : > { %v1478_v12 = vadd.f32 %v1472_v52, %v1305_v2  ;;  %v3593_v52 = vcombine.high %v3589_v49, %v3589_v49 }
 0x188   : > { %v5626_v53 = vpop.f32.mrf.mxu1 }
 0x189   : > { %3598 = vrot.lane.b32.xlu0 %v3589_v49, %s5913_s19  ;;  %v3152_v53 = vpop.permute.xlu0 %3151 }
 0x18a   : > { %v1574_v62 = vpop.f32.mrf.mxu0 }
 0x18b   : > { %v1649_v18 = vadd.f32 %v1574_v62, %v1476_v11 }
 0x18c   : > { %v1576_v14 = vpop.f32.mrf.mxu0 }
 0x18d   : > { %v1650_v25 = vadd.f32 %v1576_v14, %v1477_v17  ;;  %3594 = vrot.lane.b32.xlu0 %v6395_v46, %s5913_s19  ;;  %v3148_v55 = vpop.permute.xlu0 %3147 }
 0x18e   : > { %v1645_v9 = vpop.f32.mrf.mxu1 }
 0x18f   : > { %v1651_v20 = vadd.f32 %v1645_v9, %v1478_v12 }
 0x190   : > { %v5631_v15 = vpop.f32.mrf.mxu1 }
 0x191   : > { %3600 = vrot.lane.b32.xlu0 %v3593_v52, %s5913_s19  ;;  %v3325_v8 = vpop.permute.xlu0 %3324  ;;  %s5742_s19 = smul.u32 24, %s269_s15 }
 0x192   : > { %v1747_v23 = vpop.f32.mrf.mxu0  ;;  %v1818_v24 = vpop.f32.mrf.mxu1 }
 0x193   : > { %v1822_v26 = vadd.f32 %v1747_v23, %v1649_v18  ;;  %v1824_v27 = vadd.f32 %v1818_v24, %v1651_v20 }
 0x194   : > { %v1749_v30 = vpop.f32.mrf.mxu0  ;;  %v5636_v31 = vpop.f32.mrf.mxu1 }
 0x195   : > { %v6356_v32 = vadd.f32 %v6262_v19, %v1822_v26  ;;  %v1823_v35 = vadd.f32 %v1749_v30, %v1650_v25  ;;  %v6363_v37 = vadd.f32 %v6262_v19, %v1824_v27  ;;  %v6542_v25 = vld [vmem:[%s6810_s1 + $0x98] sm:$0xff] }
 0x197   : > { %v6366_v38 = vadd.f32 %v6262_v19, %v1823_v35  ;;  %v1853_v40 = vmul.f32 %v6358_v33, %v6356_v32  ;;  %v1855_v43 = vmul.f32 %v6368_v39, %v6363_v37  ;;  %v6381_v19 = vld [vmem:[%s6810_s1 + $0x78] sm:$0xff] }
 0x198   : > { %5454 = vmatmul.mubr.msk.f32.vlgmr.msra.gmra.mxu1 %vm300_vm4, %v6381_v19 }
 0x199   : > { %v1854_v41 = vmul.f32 %v6360_v36, %v6366_v38  ;;  %3232 = vmatprep.mubr.f32.mxu1 %v5893_v0 }
 0x19b   : > { %v1856_v44 = vadd.f32 %v1854_v41, %v1853_v40 }
 0x19d   : > { %v1857_v45 = vadd.f32 %v1856_v44, %v1855_v43  ;;  %v6567_v43 = vld [vmem:[%s6810_s1 + $0xa0] sm:$0xff] }
 0x19f   : > { %1858 = vadd.xlane.f32.xlu1 %v1857_v45 }
 0x1ab   : > { %v6556_v30 = vpop.f32.mrf.mxu1 }
 0x1ad   : > { %v2040_v44 = vpop.f32.mrf.mxu1 }
 0x1b0   : > { %3149 = vrot.lane.b32.xlu1 %v6028_v3, %s5911_s29 }
 0x1b4   : > { %2980 = vrot.lane.b32.xlu1 %v6036_v4, %s5910_s21  ;;  %s5914_s21 = smov 122  }
 0x1b5   : > { %3917 = vrot.lane.b32.xlu0 %v6400_v51, %s5914_s21 }
 0x1b8   : > { %3322 = vrot.lane.b32.xlu1 %v6028_v3, %s5912_s13  ;;  %v6416_v3 = vld [vmem:[%s6016_s17 + $0x4] sm:$0xff] }
 0x1b9   : > { %3919 = vrot.lane.b32.xlu0 %v3589_v49, %s5914_s21 }
 0x1bc   : > { %3153 = vrot.lane.b32.xlu1 %v6036_v4, %s5911_s29  ;;  %s5915_s29 = smov 56  }
 0x1bd   : > { %3915 = vrot.lane.b32.xlu0 %v6395_v46, %s5914_s21 }
 0x1c0   : > { %3326 = vrot.lane.b32.xlu1 %v6036_v4, %s5912_s13  ;;  %s5916_s13 = smov 62   ;;  %v6421_v4 = vcombine.high %v6416_v3, %v6416_v3 }
 0x1c1   : > { %4090 = vrot.lane.b32.xlu0 %v6400_v51, %s5916_s13 }
 0x1c4   : > { %3921 = vrot.lane.b32.xlu1 %v3593_v52, %s5914_s21  ;;  %s5744_s21 = smul.u32 384, %s5982_s28  ;;  %s5282_s28 = scalar_lea.sflag [#allocation4], %s269_s15 }
 0x1c5   : > { %4092 = vrot.lane.b32.xlu0 %v3589_v49, %s5916_s13 }
 0x1c8   : > { %4261 = vrot.lane.b32.xlu1 %v6395_v46, %s5899_s22 }
 0x1c9   : > { %4088 = vrot.lane.b32.xlu0 %v6395_v46, %s5916_s13 }
 0x1cc   : > { %4437 = vrot.lane.b32.xlu1 %v3589_v49, %s5915_s29 }
 0x1cd   : > { %4263 = vrot.lane.b32.xlu0 %v6400_v51, %s5899_s22 }
 0x1d0   : > { %4433 = vrot.lane.b32.xlu1 %v6395_v46, %s5915_s29 }
 0x1d1   : > { %4265 = vrot.lane.b32.xlu0 %v3589_v49, %s5899_s22 }
 0x1d5   : > { %4094 = vrot.lane.b32.xlu0 %v3593_v52, %s5916_s13 }
 0x1d9   : > { %4435 = vrot.lane.b32.xlu0 %v6400_v51, %s5915_s29 }
 0x1dd   : > { %4267 = vrot.lane.b32.xlu0 %v3593_v52, %s5899_s22  ;;  %s5837_s22 = scalar_lea.vmem %s5836_s8, 768 }
 0x1e1   : > { %4608 = vrot.lane.b32.xlu0 %v6421_v4, %s5917_s20 }
 0x1e5   : > { %4439 = vrot.lane.b32.xlu0 %v3593_v52, %s5915_s29  ;;  %s271_s29 = scalar_lea.vmem [#allocation3], %s5742_s19 }
 0x1e6   : > { %s5296_s13 = sshll.u32 %s271_s29, 4  ;;  %s6768_s13 = int_to_ptr.vmem [resolvable:$true] %s5296_s13 }
 0x1e7   : > { %p5838_p0 = scmp.lt.s32.totalorder %s6768_s13, %s5836_s8 }
 0x1e9   : > { %4781 = vrot.lane.b32.xlu0 %v6421_v4, %s5918_s16 }
 0x228   : > { %v1859_v56 = vpop.xlane.xlu1 %1858 }
 0x229   : > { %v1860_v57 = vmul.f32 0.00390625, %v1859_v56 }
 0x22b   : > { %5638 = vmatpush3.msra.mxu0 %v1860_v57  ;;  %v6593_v57 = vld [vmem:[%s6810_s1 + $0xb0] sm:$0xff] }
 0x22c   : > { %5640 = vmatmul.mubr.msk.f32.vlgmr.msra.gmra.mxu0 %vm1861_vm5, %v6428_v60  ;;  %5642 = vmatprep.subr.mxu0 %v5893_v0  ;;  %v3150_v61 = vpop.permute.xlu1 %3149 }
 0x22d   : > { %v3156_v62 = vsel %vm3155_vm6, %v3148_v55, %v3150_v61  ;;  %v3157_v6 = vsel %vm3155_vm6, %v3150_v61, %v3152_v53  ;;  %5643 = vmatpush3.msk.msra.mxu0 %vm304_vm2, %v6267_v29  ;;  %5644 = vmatprep.mubr.msk.f32.mxu0 %vm5895_vm0, %v5893_v0  ;;  %v3321_v29 = vpop.permute.xlu0 %3320 }
 0x22e   : > { %5647 = vmatprep.subr.mxu0 %v5893_v0  ;;  %5458 = vmatprep.subr.msk.mxu1 %vm304_vm2, %v3157_v6 }
 0x22f   : > { %5459 = vmatpush1.msk.msra.mxu1 %vm304_vm2, %v3156_v62 }
 0x230   : > { %v2981_v2 = vpop.permute.xlu1 %2980  ;;  %5645 = vmatmul.mubr.msk.f32.vlgmr.msra.gmra.mxu0 %vm300_vm4, %v6274_v42  ;;  %5460 = vmatmul.mubr.msk.f32.vlgmr.msra.gmra.mxu1 %vm300_vm4, %v5457_v7 }
 0x231   : > { %5648 = vmatpush3.msk.msra.mxu0 %vm304_vm2, %v6269_v34  ;;  %5649 = vmatprep.mubr.msk.f32.mxu0 %vm5895_vm0, %v5893_v0  ;;  %v5463_v34 = vld [vmem:[%s6810_s1 + $0x88] sm:$0xff] }
 0x232   : > { %5652 = vmatprep.subr.mxu0 %v5893_v0  ;;  %3405 = vmatprep.mubr.f32.mxu1 %v5893_v0 }
 0x234   : > { %v3323_v9 = vpop.permute.xlu1 %3322  ;;  %5650 = vmatmul.mubr.msk.f32.vlgmr.msra.gmra.mxu0 %vm300_vm4, %v6285_v47  ;;  %v2985_v47 = vsel %vm2982_vm3, %v6328_v63, %v2981_v2 }
 0x235   : > { %v3329_v42 = vsel %vm3328_vm8, %v3321_v29, %v3323_v9  ;;  %v3330_v10 = vsel %vm3328_vm8, %v3323_v9, %v3325_v8  ;;  %5653 = vmatpush3.msk.msra.mxu0 %vm304_vm2, %v6287_v48  ;;  %5654 = vmatprep.mubr.msk.f32.mxu0 %vm5895_vm0, %v5893_v0 }
 0x236   : > { %5464 = vmatprep.subr.msk.mxu1 %vm304_vm2, %v3330_v10  ;;  %5657 = vmatprep.subr.mxu0 %v5893_v0 }
 0x237   : > { %5465 = vmatpush1.msk.msra.mxu1 %vm304_vm2, %v3329_v42 }
 0x238   : > { %5655 = vmatmul.mubr.msk.f32.vlgmr.msra.gmra.mxu0 %vm300_vm4, %v6296_v50  ;;  %5466 = vmatmul.mubr.msk.f32.vlgmr.msra.gmra.mxu1 %vm300_vm4, %v5463_v34  ;;  %v3154_v48 = vpop.permute.xlu1 %3153 }
 0x239   : > { %5658 = vmatpush3.msk.msra.mxu0 %vm304_vm2, %v6315_v58  ;;  %5659 = vmatprep.mubr.msk.f32.mxu0 %vm5895_vm0, %v5893_v0  ;;  %v3158_v50 = vsel %vm3155_vm6, %v3152_v53, %v3154_v48 }
 0x23a   : > { %5662 = vmatprep.subr.mxu0 %v5893_v0  ;;  %5687 = vmatprep.subr.mxu1 %v5893_v0 }
 0x23b   : > { %5689 = vmatprep.mubr.msk.f32.mxu1 %vm5895_vm0, %v5893_v0 }
 0x23c   : > { %5660 = vmatmul.mubr.msk.f32.vlgmr.msra.gmra.mxu0 %vm300_vm4, %v6308_v54  ;;  %v3327_v54 = vpop.permute.xlu1 %3326 }
 0x23d   : > { %5663 = vmatpush3.msk.msra.mxu0 %vm304_vm2, %v6339_v1  ;;  %5664 = vmatprep.mubr.msk.f32.mxu0 %vm5895_vm0, %v5893_v0  ;;  %v3331_v58 = vsel %vm3328_vm8, %v3325_v8, %v3327_v54  ;;  %v6604_v8 = vld [vmem:[%s6810_s1 + $0xb8] sm:$0xff] }
 0x23e   : > { %5667 = vmatprep.subr.mxu0 %v5893_v0 }
 0x240   : > { %5665 = vmatmul.mubr.msk.f32.vlgmr.msra.gmra.mxu0 %vm300_vm4, %v6322_v59  ;;  %v6518_v59 = vld [vmem:[%s6016_s17 + $0xc] sm:$0xff]  ;;  %v3922_v26 = vpop.permute.xlu1 %3921 }
 0x241   : > { %5668 = vmatpush3.msk.msra.mxu0 %vm304_vm2, %v6350_v13  ;;  %5669 = vmatprep.mubr.msk.f32.mxu0 %vm5895_vm0, %v5893_v0  ;;  %v4605_v63 = vcombine.high %v6518_v59, %v6518_v59 }
 0x242   : > { %5672 = vmatprep.subr.mxu0 %v5893_v0  ;;  %4610 = vrot.lane.b32.xlu1 %v6518_v59, %s5917_s20 }
 0x243   : > { %4612 = vrot.lane.b32.xlu0 %v4605_v63, %s5917_s20 }
 0x244   : > { %5670 = vmatmul.mubr.msk.f32.vlgmr.msra.gmra.mxu0 %vm300_vm4, %v6335_v5  ;;  %v6527_v5 = vpop.permute.xlu0 %3489  ;;  %v4262_v41 = vpop.permute.xlu1 %4261 }
 0x245   : > { %5673 = vmatpush3.msk.msra.mxu0 %vm304_vm2, %v2985_v47  ;;  %5674 = vmatprep.mubr.msk.f32.mxu0 %vm5895_vm0, %v5893_v0 }
 0x246   : > { %5677 = vmatprep.subr.mxu0 %v5893_v0  ;;  %4606 = vrot.lane.b32.xlu1 %v6416_v3, %s5917_s20 }
 0x247   : > { %4954 = vrot.lane.b32.xlu0 %v6421_v4, %s5919_s18  ;;  %v2200_v4 = vpop.f32.mrf.mxu1 }
 0x248   : > { %5675 = vmatmul.mubr.msk.f32.vlgmr.msra.gmra.mxu0 %vm300_vm4, %v6381_v19  ;;  %v3597_v1 = vpop.permute.xlu0 %3596 }
 0x249   : > { %5678 = vmatpush3.msk.msra.mxu0 %vm304_vm2, %v3158_v50  ;;  %5679 = vmatprep.mubr.msk.f32.mxu0 %vm5895_vm0, %v5893_v0  ;;  %v2202_v61 = vpop.f32.mrf.mxu1 }
 0x24a   : > { %5682 = vmatprep.subr.mxu0 %v5893_v0 }
 0x24b   : > { %4785 = vrot.lane.b32.xlu0 %v4605_v63, %s5918_s16  ;;  %v2370_v2 = vpop.f32.mrf.mxu1 }
 0x24c   : > { %5680 = vmatmul.mubr.msk.f32.vlgmr.msra.gmra.mxu0 %vm300_vm4, %v5457_v7  ;;  %v3599_v13 = vpop.permute.xlu0 %3598 }
 0x24d   : > { %5683 = vmatpush3.msk.msra.mxu0 %vm304_vm2, %v3331_v58  ;;  %5684 = vmatprep.mubr.msk.f32.mxu0 %vm5895_vm0, %v5893_v0  ;;  %v3604_v11 = vsel %vm3602_vm9, %v3597_v1, %v3599_v13  ;;  %v2372_v42 = vpop.f32.mrf.mxu1 }
 0x24e   : > { %5474 = vmatprep.subr.msk.mxu0 %vm304_vm2, %v3604_v11 }
 0x24f   : > { %4958 = vrot.lane.b32.xlu0 %v4605_v63, %s5919_s18 }
 0x250   : > { %5685 = vmatmul.mubr.msk.f32.vlgmr.msra.gmra.mxu0 %vm300_vm4, %v5463_v34  ;;  %v3595_v12 = vpop.permute.xlu0 %3594  ;;  %v2543_v34 = vpop.f32.mrf.mxu1 }
 0x251   : > { %3679 = vmatprep.mubr.f32.mxu0 %v5893_v0  ;;  %v3603_v14 = vsel %vm3602_vm9, %v3595_v12, %v3597_v1 }
 0x252   : > { %5475 = vmatpush1.msk.msra.mxu0 %vm304_vm2, %v3603_v14  ;;  %v2545_v50 = vpop.f32.mrf.mxu1 }
 0x253   : > { %5479 = vmatprep.subr.msk.mxu0 %vm304_vm2, %v6400_v51  ;;  %v6579_v51 = vld [vmem:[%s6810_s1 + $0xa8] sm:$0xff] }
 0x254   : > { %v3601_v15 = vpop.permute.xlu0 %3600  ;;  %5476 = vmatmul.mubr.msk.f32.vlgmr.msra.gmra.mxu0 %vm300_vm4, %v6542_v25  ;;  %v2715_v58 = vpop.f32.mrf.mxu1 }
 0x255   : > { %v6533_v16 = vsel %vm3602_vm9, %v3599_v13, %v3601_v15  ;;  %5480 = vmatpush1.msk.msra.mxu0 %vm304_vm2, %v6395_v46  ;;  %3830 = vmatprep.mubr.f32.mxu0 %v5893_v0  ;;  %v4438_v46 = vpop.permute.xlu1 %4437 }
 0x256   : > { %v2717_v12 = vpop.f32.mrf.mxu1 }
 0x258   : > { %v3918_v17 = vpop.permute.xlu0 %3917  ;;  %5481 = vmatmul.mubr.msk.f32.vlgmr.msra.gmra.mxu0 %vm300_vm4, %v6554_v28 }
 0x259   : > { %4000 = vmatprep.mubr.f32.mxu0 %v5893_v0  ;;  %v4434_v56 = vpop.permute.xlu1 %4433 }
 0x25c   : > { %v3920_v18 = vpop.permute.xlu0 %3919 }
 0x25d   : > { %v3925_v23 = vsel %vm3923_vm10, %v3918_v17, %v3920_v18  ;;  %v6546_v27 = vsel %vm3923_vm10, %v3920_v18, %v3922_v26 }
 0x25e   : > { %5485 = vmatprep.subr.msk.mxu0 %vm304_vm2, %v3925_v23  ;;  %v2201_v23 = vadd.f32 %v2200_v4, %v6556_v30 }
 0x260   : > { %v3916_v20 = vpop.permute.xlu0 %3915 }
 0x261   : > { %v3924_v31 = vsel %vm3923_vm10, %v3916_v20, %v3918_v17  ;;  %v2888_v17 = vpop.f32.mrf.mxu1  ;;  %v2203_v20 = vadd.f32 %v2202_v61, %v2040_v44 }
 0x262   : > { %5486 = vmatpush1.msk.msra.mxu0 %vm304_vm2, %v3924_v31 }
 0x263   : > { %5487 = vmatmul.mubr.msk.f32.vlgmr.msra.gmra.mxu0 %vm300_vm4, %v6567_v43  ;;  %v2446_v26 = vadd.f32 %v2372_v42, %v2203_v20 }
 0x264   : > { %v4091_v21 = vpop.permute.xlu0 %4090  ;;  %4173 = vmatprep.mubr.f32.mxu0 %v5893_v0 }
 0x268   : > { %v4093_v22 = vpop.permute.xlu0 %4092 }
 0x269   : > { %v4098_v35 = vsel %vm4096_vm11, %v4091_v21, %v4093_v22 }
 0x26a   : > { %5491 = vmatprep.subr.msk.mxu0 %vm304_vm2, %v4098_v35 }
 0x26c   : > { %v4089_v24 = vpop.permute.xlu0 %4088 }
 0x26d   : > { %v4097_v45 = vsel %vm4096_vm11, %v4089_v24, %v4091_v21 }
 0x26e   : > { %5492 = vmatpush1.msk.msra.mxu0 %vm304_vm2, %v4097_v45  ;;  %v2619_v45 = vadd.f32 %v2545_v50, %v2446_v26 }
 0x26f   : > { %5493 = vmatmul.mubr.msk.f32.vlgmr.msra.gmra.mxu0 %vm300_vm4, %v6579_v51 }
 0x270   : > { %v4264_v40 = vpop.permute.xlu0 %4263  ;;  %4345 = vmatprep.mubr.f32.mxu0 %v5893_v0 }
 0x271   : > { %v4269_v52 = vsel %vm976_vm7, %v4262_v41, %v4264_v40 }
 0x274   : > { %v4266_v19 = vpop.permute.xlu0 %4265 }
 0x275   : > { %v4270_v49 = vsel %vm976_vm7, %v4264_v40, %v4266_v19  ;;  %v2445_v40 = vadd.f32 %v2370_v2, %v2201_v23 }
 0x276   : > { %5497 = vmatprep.subr.msk.mxu0 %vm304_vm2, %v4270_v49 }
 0x277   : > { %5498 = vmatpush1.msk.msra.mxu0 %vm304_vm2, %v4269_v52  ;;  %v2618_v49 = vadd.f32 %v2543_v34, %v2445_v40 }
 0x278   : > { %v4095_v53 = vpop.permute.xlu0 %4094  ;;  %5499 = vmatmul.mubr.msk.f32.vlgmr.msra.gmra.mxu0 %vm300_vm4, %v6593_v57 }
 0x279   : > { %v6584_v55 = vsel %vm4096_vm11, %v4093_v22, %v4095_v53  ;;  %4518 = vmatprep.mubr.f32.mxu0 %v5893_v0  ;;  %v2890_v22 = vpop.f32.mrf.mxu1  ;;  %v2791_v53 = vadd.f32 %v2717_v12, %v2619_v45 }
 0x27b   : > { %v3061_v31 = vpop.f32.mrf.mxu1  ;;  %v2964_v61 = vadd.f32 %v2890_v22, %v2791_v53 }
 0x27c   : > { %v4436_v62 = vpop.permute.xlu0 %4435 }
 0x27d   : > { %v4443_v6 = vsel %vm4441_vm12, %v4436_v62, %v4438_v46  ;;  %v4442_v7 = vsel %vm4441_vm12, %v4434_v56, %v4436_v62 }
 0x27e   : > { %5503 = vmatprep.subr.msk.mxu0 %vm304_vm2, %v4443_v6  ;;  %v2790_v6 = vadd.f32 %v2715_v58, %v2618_v49 }
 0x27f   : > { %5504 = vmatpush1.msk.msra.mxu0 %vm304_vm2, %v4442_v7 }
 0x280   : > { %v4268_v29 = vpop.permute.xlu0 %4267  ;;  %5505 = vmatmul.mubr.msk.f32.vlgmr.msra.gmra.mxu0 %vm300_vm4, %v6604_v8  ;;  %v2963_v30 = vadd.f32 %v2888_v17, %v2790_v6 }
 0x281   : > { %v6608_v9 = vsel %vm976_vm7, %v4266_v19, %v4268_v29  ;;  %4691 = vmatprep.mubr.f32.mxu0 %v5893_v0  ;;  %v3063_v19 = vpop.f32.mrf.mxu1  ;;  %vm4787_vm7 = vcmask 990208  }
 0x282   : > { %v3137_v42 = vadd.f32 %v3063_v19, %v2964_v61  ;;  %v3136_v2 = vadd.f32 %v3061_v31, %v2963_v30 }
 0x284   : > { %v4609_v10 = vpop.permute.xlu0 %4608 }
 0x288   : > { %v4440_v47 = vpop.permute.xlu0 %4439 }
 0x289   : > { %v6614_v48 = vsel %vm4441_vm12, %v4438_v46, %v4440_v47 }
 0x28c   : > { %v6616_v54 = vpop.permute.xlu0 %4781 }
 0x2b4   : > { %v4611_v63 = vpop.permute.xlu1 %4610 }
 0x2b5   : > { %v4616_v1 = vsel %vm4614_vm13, %v4609_v10, %v4611_v63  ;;  %v4613_v13 = vpop.permute.xlu0 %4612 }
 0x2b6   : > { %5509 = vmatprep.subr.msk.mxu0 %vm304_vm2, %v4616_v1  ;;  %v6619_v11 = vsel %vm4614_vm13, %v4611_v63, %v4613_v13 }
 0x2b8   : > { %v4607_v14 = vpop.permute.xlu1 %4606 }
 0x2b9   : > { %v4615_v15 = vsel %vm4614_vm13, %v4607_v14, %v4609_v10 }
 0x2ba   : > { %5510 = vmatpush1.msk.msra.mxu0 %vm304_vm2, %v4615_v15 }
 0x2ec   : > { %v1931_v18 = vpop.f32.mrf.mxu0 }
 0x2ee   : > { %v5641_v21 = vpop.f32.mrf.mxu0 }
 0x2f0   : > { %v2109_v24 = vpop.f32.mrf.mxu0  ;;  %v3234_v56 = vpop.f32.mrf.mxu1 }
 0x2f1   : > { %v3309_v12 = vadd.f32 %v3234_v56, %v3136_v2 }
 0x2f2   : > { %v5646_v35 = vpop.f32.mrf.mxu0  ;;  %v3236_v7 = vpop.f32.mrf.mxu1 }
 0x2f3   : > { %v3310_v1 = vadd.f32 %v3236_v7, %v3137_v42  ;;  %v6643_v7 = vld [vmem:[%s6810_s1 + $0xc0] sm:$0xff]  ;;  %v3586_v42 = vld [vmem:[%s6016_s17 + $0x8] sm:$0xf]  ;;  %s5831_s17 = scalar_lea.vmem %s6768_s13, 384 }
 0x2f4   : > { %v2271_v41 = vpop.f32.mrf.mxu0  ;;  %5511 = vmatmul.mubr.msk.f32.vlgmr.msra.gmra.mxu0 %vm300_vm4, %v6643_v7  ;;  %p5832_p11 = scmp.ne.s32.totalorder %s6768_s13, %s5831_s17  ;;  %p5839_p1 = scmp.lt.s32.totalorder %s5837_s22, %s5831_s17 }
 0x2f5   : > { %v2272_v63 = vadd.f32 %v2271_v41, %v2109_v24  ;;  %4864 = vmatprep.mubr.f32.mxu0 %v5893_v0 }
 0x2f6   : > { %v5651_v46 = vpop.f32.mrf.mxu0  ;;  %p5833_p12 = pnand %p5832_p11, %p5999_p5  ;;  %p5840_p2 = por %p5839_p1, %p5838_p0 }
 0x2f8   : > { %v2441_v52 = vpop.f32.mrf.mxu0  ;;  %v3407_v10 = vpop.f32.mrf.mxu1  ;;  %p5834_p13 = pneg %p5833_p12 }
 0x2f9   : > { %v2447_v13 = vadd.f32 %v2441_v52, %v2272_v63  ;;  %v3482_v23 = vadd.f32 %v3407_v10, %v3309_v12 }
 0x2fa   : > { %v5656_v62 = vpop.f32.mrf.mxu0  ;;  %v3409_v34 = vpop.f32.mrf.mxu1  ;;  %p5841_p3 = pnand %p5840_p2, %p5834_p13 }
 0x2fb   : > { %v3483_v58 = vadd.f32 %v3409_v34, %v3310_v1  ;;  %v6627_v24 = vadd.f32 %v6527_v5, %v3482_v23 }
 0x2fc   : > { %v2614_v44 = vpop.f32.mrf.mxu0 }
 0x2fd   : > { %v2620_v15 = vadd.f32 %v2614_v44, %v2447_v13  ;;  %v6624_v35 = vadd.f32 %v6527_v5, %v3483_v58  ;;  %v3499_v52 = vmul.f32 %v6627_v24, %v6358_v33  ;;  %v5414_v44 = vmul.f32 -1.442695, %v1931_v18 }
 0x2fe   : > { %v5661_v29 = vpop.f32.mrf.mxu0 }
 0x2ff   : > { %v3500_v19 = vmul.f32 %v6624_v35, %v6360_v36  ;;  %5819 = vpow2.f32 %v5414_v44 }
 0x300   : > { %v2786_v4 = vpop.f32.mrf.mxu0 }
 0x301   : > { %v2792_v21 = vadd.f32 %v2786_v4, %v2620_v15  ;;  %v3502_v62 = vadd.f32 %v3500_v19, %v3499_v52 }
 0x302   : > { %v5666_v47 = vpop.f32.mrf.mxu0 }
 0x303   : > { %v5514_v47 = vld [vmem:[%s6810_s1 + $0xc8] sm:$0xff] }
 0x304   : > { %v2959_v50 = vpop.f32.mrf.mxu0 }
 0x305   : > { %v2965_v26 = vadd.f32 %v2959_v50, %v2792_v21 }
 0x306   : > { %v5671_v14 = vpop.f32.mrf.mxu0 }
 0x308   : > { %v3132_v20 = vpop.f32.mrf.mxu0 }
 0x309   : > { %v3138_v40 = vadd.f32 %v3132_v20, %v2965_v26 }
 0x30a   : > { %v5676_v22 = vpop.f32.mrf.mxu0 }
 0x30c   : > { %v3305_v17 = vpop.f32.mrf.mxu0  ;;  %v5820_v61 = vpop.eup %5819 }
 0x30d   : > { %v3311_v41 = vadd.f32 %v3305_v17, %v3138_v40  ;;  %v1938_v29 = vadd.f32 1.0, %v5820_v61 }
 0x30e   : > { %v5681_v31 = vpop.f32.mrf.mxu0 }
 0x30f   : > { %5821 = vrcp.f32 %v1938_v29 }
 0x310   : > { %v3478_v45 = vpop.f32.mrf.mxu0 }
 0x311   : > { %v3484_v46 = vadd.f32 %v3478_v45, %v3311_v41 }
 0x312   : > { %v5686_v49 = vpop.f32.mrf.mxu0 }
 0x313   : > { %v6634_v53 = vadd.f32 %v6527_v5, %v3484_v46  ;;  %v5526_v5 = vld [vmem:[%s6811_s2 + $0x10] sm:$0xff] }
 0x315   : > { %v3501_v56 = vmul.f32 %v6634_v53, %v6368_v39 }
 0x317   : > { %v3503_v6 = vadd.f32 %v3502_v62, %v3501_v56 }
 0x319   : > { %3504 = vadd.xlane.f32.xlu1 %v3503_v6 }
 0x31c   : > { %v5822_v18 = vpop.eup %5821 }
 0x32a   : > { %4783 = vrot.lane.b32.xlu1 %v6518_v59, %s5918_s16 }
 0x32e   : > { %4779 = vrot.lane.b32.xlu1 %v6416_v3, %s5918_s16 }
 0x332   : > { %4956 = vrot.lane.b32.xlu1 %v6518_v59, %s5919_s18 }
 0x336   : > { %4952 = vrot.lane.b32.xlu1 %v6416_v3, %s5919_s18  ;;  %s6766_s18 = scalar_lea.hbm %s6816_s7, %s5744_s21 }
 0x33a   : > { %5121 = vperm.xlu1 %5812, %v5526_v5  }
 0x33e   : > { %5220 = vperm.xlu1 %5812, %v5822_v18  }
 0x3a2   : > { %v3505_v30 = vpop.xlane.xlu1 %3504 }
 0x3a3   : > { %v3506_v4 = vmul.f32 0.00390625, %v3505_v30 }
 0x3a5   : > { %5688 = vmatpush3.msra.mxu1 %v3506_v4 }
 0x3a6   : > { %5690 = vmatmul.mubr.msk.f32.vlgmr.msra.gmra.mxu1 %vm1861_vm5, %v6428_v60  ;;  %5692 = vmatprep.subr.mxu1 %v5893_v0  ;;  %v4784_v59 = vpop.permute.xlu1 %4783 }
 0x3a7   : > { %v4789_v3 = vsel %vm4787_vm7, %v6616_v54, %v4784_v59  ;;  %5693 = vmatpush3.msk.msra.mxu1 %vm304_vm2, %v6533_v16  ;;  %5694 = vmatprep.mubr.msk.f32.mxu1 %vm5895_vm0, %v5893_v0  ;;  %v4955_v16 = vpop.permute.xlu0 %4954 }
 0x3a8   : > { %5697 = vmatprep.subr.mxu1 %v5893_v0  ;;  %5515 = vmatprep.subr.msk.mxu0 %vm304_vm2, %v4789_v3 }
 0x3aa   : > { %v4780_v10 = vpop.permute.xlu1 %4779  ;;  %5695 = vmatmul.mubr.msk.f32.vlgmr.msra.gmra.mxu1 %vm300_vm4, %v6542_v25 }
 0x3ab   : > { %v4788_v2 = vsel %vm4787_vm7, %v4780_v10, %v6616_v54  ;;  %5698 = vmatpush3.msk.msra.mxu1 %vm304_vm2, %v3586_v42  ;;  %5699 = vmatprep.mubr.msk.f32.mxu1 %vm5895_vm0, %v5893_v0 }
 0x3ac   : > { %5702 = vmatprep.subr.mxu1 %v5893_v0  ;;  %5516 = vmatpush1.msk.msra.mxu0 %vm304_vm2, %v4788_v2 }
 0x3ad   : > { %5517 = vmatmul.mubr.msk.f32.vlgmr.msra.gmra.mxu0 %vm300_vm4, %v5514_v47 }
 0x3ae   : > { %v4957_v25 = vpop.permute.xlu1 %4956  ;;  %5700 = vmatmul.mubr.msk.f32.vlgmr.msra.gmra.mxu1 %vm300_vm4, %v6554_v28  ;;  %5037 = vmatprep.mubr.f32.mxu0 %v5893_v0  ;;  %v5520_v28 = vld [vmem:[%s6810_s1 + $0xd0] sm:$0xff] }
 0x3af   : > { %5703 = vmatpush3.msk.msra.mxu1 %vm304_vm2, %v6546_v27  ;;  %5704 = vmatprep.mubr.msk.f32.mxu1 %vm5895_vm0, %v5893_v0  ;;  %v4962_v54 = vsel %vm4960_vm14, %v4955_v16, %v4957_v25  ;;  %v4786_v27 = vpop.permute.xlu0 %4785 }
 0x3b0   : > { %5707 = vmatprep.subr.mxu1 %v5893_v0  ;;  %5521 = vmatprep.subr.msk.mxu0 %vm304_vm2, %v4962_v54 }
 0x3b2   : > { %v4953_v63 = vpop.permute.xlu1 %4952  ;;  %5705 = vmatmul.mubr.msk.f32.vlgmr.msra.gmra.mxu1 %vm300_vm4, %v6567_v43  ;;  %v4790_v43 = vsel %vm4787_vm7, %v4784_v59, %v4786_v27 }
 0x3b3   : > { %v4961_v50 = vsel %vm4960_vm14, %v4953_v63, %v4955_v16  ;;  %5708 = vmatpush3.msk.msra.mxu1 %vm304_vm2, %v6584_v55  ;;  %5709 = vmatprep.mubr.msk.f32.mxu1 %vm5895_vm0, %v5893_v0 }
 0x3b4   : > { %5522 = vmatpush1.msk.msra.mxu0 %vm304_vm2, %v4961_v50  ;;  %5712 = vmatprep.subr.mxu1 %v5893_v0 }
 0x3b5   : > { %5523 = vmatmul.mubr.msk.f32.vlgmr.msra.gmra.mxu0 %vm300_vm4, %v5520_v28  ;;  %5737 = vmatprep.subr.mxu0 %v5893_v0 }
 0x3b6   : > { %5710 = vmatmul.mubr.msk.f32.vlgmr.msra.gmra.mxu1 %vm300_vm4, %v6579_v51  ;;  %5739 = vmatprep.mubr.msk.f32.mxu0 %vm5895_vm0, %v5893_v0  ;;  %v4959_v51 = vpop.permute.xlu0 %4958 }
 0x3b7   : > { %5713 = vmatpush3.msk.msra.mxu1 %vm304_vm2, %v6608_v9  ;;  %5714 = vmatprep.mubr.msk.f32.mxu1 %vm5895_vm0, %v5893_v0  ;;  %v4963_v55 = vsel %vm4960_vm14, %v4957_v25, %v4959_v51 }
 0x3b8   : > { %5717 = vmatprep.subr.mxu1 %v5893_v0 }
 0x3ba   : > { %5715 = vmatmul.mubr.msk.f32.vlgmr.msra.gmra.mxu1 %vm300_vm4, %v6593_v57  ;;  %v3681_v57 = vpop.f32.mrf.mxu0 }
 0x3bb   : > { %5718 = vmatpush3.msk.msra.mxu1 %vm304_vm2, %v6614_v48  ;;  %5719 = vmatprep.mubr.msk.f32.mxu1 %vm5895_vm0, %v5893_v0 }
 0x3bc   : > { %5722 = vmatprep.subr.mxu1 %v5893_v0 }
 0x3be   : > { %5720 = vmatmul.mubr.msk.f32.vlgmr.msra.gmra.mxu1 %vm300_vm4, %v6604_v8  ;;  %v3683_v8 = vpop.f32.mrf.mxu0 }
 0x3bf   : > { %5723 = vmatpush3.msk.msra.mxu1 %vm304_vm2, %v6619_v11  ;;  %5724 = vmatprep.mubr.msk.f32.mxu1 %vm5895_vm0, %v5893_v0 }
 0x3c0   : > { %5727 = vmatprep.subr.mxu1 %v5893_v0  ;;  %v3832_v9 = vpop.f32.mrf.mxu0 }
 0x3c1   : > { %v3833_v23 = vadd.f32 %v3832_v9, %v3681_v57 }
 0x3c2   : > { %5725 = vmatmul.mubr.msk.f32.vlgmr.msra.gmra.mxu1 %vm300_vm4, %v6643_v7  ;;  %v3834_v48 = vpop.f32.mrf.mxu0 }
 0x3c3   : > { %5728 = vmatpush3.msk.msra.mxu1 %vm304_vm2, %v4790_v43  ;;  %5729 = vmatprep.mubr.msk.f32.mxu1 %vm5895_vm0, %v5893_v0  ;;  %v3835_v26 = vadd.f32 %v3834_v48, %v3683_v8 }
 0x3c4   : > { %5732 = vmatprep.subr.mxu1 %v5893_v0  ;;  %v4002_v11 = vpop.f32.mrf.mxu0 }
 0x3c5   : > { %v4077_v31 = vadd.f32 %v4002_v11, %v3833_v23 }
 0x3c6   : > { %5730 = vmatmul.mubr.msk.f32.vlgmr.msra.gmra.mxu1 %vm300_vm4, %v5514_v47  ;;  %v4004_v1 = vpop.f32.mrf.mxu0 }
 0x3c7   : > { %5733 = vmatpush3.msk.msra.mxu1 %vm304_vm2, %v4963_v55  ;;  %5734 = vmatprep.mubr.msk.f32.mxu1 %vm5895_vm0, %v5893_v0  ;;  %v4078_v41 = vadd.f32 %v4004_v1, %v3835_v26  ;;  %v5122_v1 = vpop.permute.xlu1 %5121 }
 0x3c8   : > { %v4175_v13 = vpop.f32.mrf.mxu0 }
 0x3c9   : > { %v4250_v49 = vadd.f32 %v4175_v13, %v4077_v31 }
 0x3ca   : > { %5735 = vmatmul.mubr.msk.f32.vlgmr.msra.gmra.mxu1 %vm300_vm4, %v5520_v28  ;;  %v4177_v34 = vpop.f32.mrf.mxu0 }
 0x3cb   : > { %v4251_v52 = vadd.f32 %v4177_v34, %v4078_v41 }
 0x3cc   : > { %v4347_v14 = vpop.f32.mrf.mxu0 }
 0x3cd   : > { %v4422_v44 = vadd.f32 %v4347_v14, %v4250_v49 }
 0x3ce   : > { %v4349_v12 = vpop.f32.mrf.mxu0 }
 0x3cf   : > { %v4423_v61 = vadd.f32 %v4349_v12, %v4251_v52 }
 0x3d0   : > { %v4520_v15 = vpop.f32.mrf.mxu0 }
 0x3d1   : > { %v4595_v4 = vadd.f32 %v4520_v15, %v4422_v44 }
 0x3d2   : > { %v4522_v22 = vpop.f32.mrf.mxu0 }
 0x3d3   : > { %v4596_v59 = vadd.f32 %v4522_v22, %v4423_v61 }
 0x3d4   : > { %v4693_v40 = vpop.f32.mrf.mxu0 }
 0x3d5   : > { %v4768_v47 = vadd.f32 %v4693_v40, %v4595_v4 }
 0x3d6   : > { %v4695_v19 = vpop.f32.mrf.mxu0 }
 0x3d7   : > { %v4769_v16 = vadd.f32 %v4695_v19, %v4596_v59 }
 0x466   : > { %v3573_v20 = vpop.f32.mrf.mxu1 }
 0x467   : > { %v5471_v58 = vmul.f32 -1.442695, %v3573_v20 }
 0x468   : > { %v5691_v21 = vpop.f32.mrf.mxu1 }
 0x469   : > { %5823 = vpow2.f32 %v5471_v58 }
 0x46a   : > { %v3752_v0 = vpop.f32.mrf.mxu1 }
 0x46c   : > { %v5696_v17 = vpop.f32.mrf.mxu1 }
 0x46d   : > { %v4866_v62 = vpop.f32.mrf.mxu0 }
 0x46e   : > { %v3903_v45 = vpop.f32.mrf.mxu1  ;;  %v4941_v50 = vadd.f32 %v4866_v62, %v4768_v47 }
 0x46f   : > { %v4868_v18 = vpop.f32.mrf.mxu0  ;;  %v3904_v2 = vadd.f32 %v3903_v45, %v3752_v0 }
 0x470   : > { %v5701_v46 = vpop.f32.mrf.mxu1  ;;  %v4942_v27 = vadd.f32 %v4868_v18, %v4769_v16 }
 0x472   : > { %v4073_v56 = vpop.f32.mrf.mxu1 }
 0x473   : > { %v4079_v54 = vadd.f32 %v4073_v56, %v3904_v2  ;;  %v5221_v56 = vpop.permute.xlu1 %5220 }
 0x474   : > { %v5706_v6 = vpop.f32.mrf.mxu1 }
 0x475   : > { %v5039_v42 = vpop.f32.mrf.mxu0 }
 0x476   : > { %v5824_v7 = vpop.eup %5823  ;;  %v4246_v29 = vpop.f32.mrf.mxu1  ;;  %v5114_v9 = vadd.f32 %v5039_v42, %v4941_v50 }
 0x477   : > { %v3580_v5 = vadd.f32 1.0, %v5824_v7  ;;  %v5041_v63 = vpop.f32.mrf.mxu0  ;;  %v4252_v43 = vadd.f32 %v4246_v29, %v4079_v54  ;;  %v5223_v7 = vmul.f32 %v5221_v56, %v6356_v32  ;;  %v5224_v29 = vmul.f32 %v5221_v56, %v6366_v38 }
 0x478   : > { %v5711_v30 = vpop.f32.mrf.mxu1  ;;  %v5115_v55 = vadd.f32 %v5041_v63, %v4942_v27  ;;  %v5124_v15 = vadd.f32 %v5122_v1, %v5114_v9 }
 0x479   : > { %5825 = vrcp.f32 %v3580_v5  ;;  %v5225_v5 = vmul.f32 %v5221_v56, %v6363_v37 }
 0x47a   : > { %v4418_v3 = vpop.f32.mrf.mxu1  ;;  %v5125_v34 = vadd.f32 %v5122_v1, %v5115_v55  ;;  %v5131_v26 = vmul.f32 %v5124_v15, %v6358_v33 }
 0x47b   : > { %v4424_v57 = vadd.f32 %v4418_v3, %v4252_v43 }
 0x47c   : > { %v5716_v10 = vpop.f32.mrf.mxu1  ;;  %v5132_v21 = vmul.f32 %v5125_v34, %v6360_v36 }
 0x47e   : > { %v4591_v25 = vpop.f32.mrf.mxu1  ;;  %v5134_v40 = vadd.f32 %v5132_v21, %v5131_v26 }
 0x47f   : > { %v4597_v48 = vadd.f32 %v4591_v25, %v4424_v57 }
 0x480   : > { %v5721_v28 = vpop.f32.mrf.mxu1 }
 0x482   : > { %v4764_v51 = vpop.f32.mrf.mxu1 }
 0x483   : > { %v4770_v14 = vadd.f32 %v4764_v51, %v4597_v48 }
 0x484   : > { %v5726_v8 = vpop.f32.mrf.mxu1 }
 0x486   : > { %v5826_v11 = vpop.eup %5825  ;;  %v4937_v13 = vpop.f32.mrf.mxu1 }
 0x487   : > { %5231 = vperm.xlu1 %5812, %v5826_v11   ;;  %v4943_v20 = vadd.f32 %v4937_v13, %v4770_v14 }
 0x488   : > { %v5731_v12 = vpop.f32.mrf.mxu1 }
 0x48a   : > { %v5110_v58 = vpop.f32.mrf.mxu1 }
 0x48b   : > { %v5116_v22 = vadd.f32 %v5110_v58, %v4943_v20 }
 0x48c   : > { %v5736_v23 = vpop.f32.mrf.mxu1 }
 0x48d   : > { %v5126_v0 = vadd.f32 %v5122_v1, %v5116_v22 }
 0x48f   : > { %v5133_v17 = vmul.f32 %v5126_v0, %v6368_v39  ;;  %v5257_v39 = vld [vmem:[%s6813_s4] sm:$0xff] }
 0x491   : > { %v5135_v31 = vadd.f32 %v5134_v40, %v5133_v17 }
 0x493   : > { %5136 = vadd.xlane.f32.xlu0 %v5135_v31 }
 0x502   : > { %v5232_v62 = vpop.permute.xlu1 %5231 }
 0x503   : > { %v5234_v6 = vmul.f32 %v5232_v62, %v6627_v24  ;;  %v5235_v44 = vmul.f32 %v5232_v62, %v6624_v35  ;;  %v5236_v61 = vmul.f32 %v5232_v62, %v6634_v53 }
 0x505   : > { %v5237_v18 = vadd.f32 %v5234_v6, %v5223_v7  ;;  %v5238_v30 = vadd.f32 %v5235_v44, %v5224_v29  ;;  %v5239_v59 = vadd.f32 %v5236_v61, %v5225_v5 }
 0x51c   : > { %v5137_v41 = vpop.xlane.xlu0 %5136 }
 0x51d   : > { %v5138_v45 = vmul.f32 0.00390625, %v5137_v41 }
 0x51f   : > { %5738 = vmatpush3.msra.mxu0 %v5138_v45 }
 0x520   : > { %5740 = vmatmul.mubr.msk.f32.vlgmr.msra.gmra.mxu0 %vm1861_vm5, %v6428_v60  ;;  %v5266_v60 = vld [vmem:[%s6814_s5] sm:$0xff] }
 0x5e0   : > { %v5205_v19 = vpop.f32.mrf.mxu0 }
 0x5e1   : > { %v5528_v46 = vmul.f32 -1.442695, %v5205_v19 }
 0x5e2   : > { %v5741_v49 = vpop.f32.mrf.mxu0 }
 0x5e3   : > { %5827 = vpow2.f32 %v5528_v46 }
 0x5f0   : > { %v5828_v36 = vpop.eup %5827 }
 0x5f1   : > { %v5212_v52 = vadd.f32 1.0, %v5828_v36 }
 0x5f3   : > { %5829 = vrcp.f32 %v5212_v52 }
 0x600   : > { %v5830_v33 = vpop.eup %5829 }
 0x601   : > { %5245 = vperm.xlu1 %5812, %v5830_v33  }
 0x605   : > { %5260 = vperm.xlu1 %5812, %v5257_v39  }
 0x609   : > { %5269 = vperm.xlu1 %5812, %v5266_v60  }
 0x67c   : > { %v5246_v4 = vpop.permute.xlu1 %5245 }
 0x67d   : > { %v5248_v3 = vmul.f32 %v5246_v4, %v5124_v15  ;;  %v5249_v24 = vmul.f32 %v5246_v4, %v5125_v34  ;;  %v5250_v42 = vmul.f32 %v5246_v4, %v5126_v0 }
 0x67f   : > { %v5251_v35 = vadd.f32 %v5248_v3, %v5237_v18  ;;  %v5252_v10 = vadd.f32 %v5249_v24, %v5238_v30  ;;  %v5253_v53 = vadd.f32 %v5250_v42, %v5239_v59 }
 0x680   : > { %v5261_v47 = vpop.permute.xlu1 %5260 }
 0x681   : > { %v5254_v2 = vmul.f32 0.33333334, %v5251_v35  ;;  %v5255_v32 = vmul.f32 0.33333334, %v5252_v10  ;;  %v5256_v16 = vmul.f32 0.33333334, %v5253_v53 }
 0x683   : > { %v5263_v38 = vmul.f32 %v5261_v47, %v5254_v2  ;;  %v5264_v25 = vmul.f32 %v5261_v47, %v5255_v32  ;;  %v5265_v37 = vmul.f32 %v5261_v47, %v5256_v16 }
 0x684   : > { %v5270_v54 = vpop.permute.xlu1 %5269 }
 0x685   : > { %v5272_v63 = vadd.f32 %v5270_v54, %v5263_v38  ;;  %v5273_v28 = vadd.f32 %v5270_v54, %v5264_v25  ;;  %v5274_v50 = vadd.f32 %v5270_v54, %v5265_v37 }
 0x687   : > { %v5275_v27 = vmax.f32 %v5272_v63, 0.0  ;;  %v5276_v43 = vmax.f32 %v5273_v28, 0.0  ;;  %v5277_v51 = vmax.f32 %v5274_v50, 0.0 }
 0x689   : > { %5278 = vst [vmem:[%s271_s29] sm:$0xff] %v5275_v27  ;;  %5279 = vst [vmem:[%s271_s29 + $0x8] sm:$0xff] %v5276_v43 }
 0x68a   : > { %5280 = vst [vmem:[%s271_s29 + $0x10] sm:$0xff] %v5277_v51 }
 0x68b   : > { %5844 = shalt.err (!%p5841_p3)
}
 0x68c   : > { %s5845_s9 = scalar_lea.hbm %s6766_s18, 384  ;;  %s5849_s19 = scalar_lea.hbm %s6816_s7, 768 }
 0x68d   : > { %p5846_p4 = scmp.ne.s32.totalorder %s6766_s18, %s5845_s9  ;;  %p5850_p9 = scmp.lt.s32.totalorder %s6766_s18, %s6816_s7 }
 0x68e   : > { %p5851_p10 = scmp.lt.s32.totalorder %s5849_s19, %s5845_s9 }
 0x68f   : > { %p5847_p7 = pnand %p5846_p4, %p5999_p5 }
 0x690   : > { %p5852_p11 = por %p5851_p10, %p5850_p9 }
 0x691   : > { %p5848_p8 = pneg %p5847_p7 }
 0x693   : > { %p5853_p12 = pnand %p5852_p11, %p5848_p8 }
 0x695   : > { %5856 = shalt.err (!%p5853_p12)
}
 0x696   : > { %5745 = dma.vmem_to_hbm [thread:$0]  (%p5999_p5), %s6768_s13, 384, %s6766_s18, %s5282_s28  }
 0x697 PF: > { %p5751_p13 = scmp.ge.s32.totalorder %s5891_s27, 2  ;;  %s5308_s20 = sand.u32 1, %s5879_s24  }
 0x698   : > { %s5309_s16 = scalar_lea.sflag [#allocation4], %s5308_s20 }
 0x699   : > { %p5748_p0 = pnand %p5751_p13, %p6003_p6 }
 0x69b   : > { %p5749_p1 = pneg %p5748_p0 }
 0x69d   : > { %5874 = dma.done.wait (%p5749_p1), %s5309_s16, 384  }
 0x69e   : > { %5876 = vsyncadd (%p5749_p1), %s5309_s16, 4294966912  ;;  %p17_p2 = scmp.ge.s32.totalorder %s5986_s30, 4   ;;  %s6819_s24 = smov %s5883_s25 }
 0x69f   : > { %s6820_s25 = smov %s5887_s26  ;;  %s6821_s26 = smov %s5997_s10 }
 0x6a0   : > { %s6822_s27 = smov %s5986_s30  ;;  %19 = sbr.rel (!%p17_p2) target bundleno = 3 (0x3), region = 113 }
 0x6a5   :  { %5314 = vsyncpa [#allocation4], 1 }
 0x6a6   :  { %5316 = vsyncpa [#allocation4 + $0x1], 1 }

</bundles_post_ra>
